<compile_context>
chip_gen: v6e
topology: v6e:2x2x1
jax: 0.10.0
libtpu: 0.0.40
codegen_flags: <defaults>
</compile_context>

<pallas_src>
import functools

import numpy as np
import jax
import jax.numpy as jnp
from jax.experimental import pallas as pl
from jax.experimental.pallas import tpu as pltpu

T_MAX = 8  # max admissions handled by the single compiled kernel


def _round_up(x, m):
    return ((x + m - 1) // m) * m


# ---------------------------------------------------------------------------
# Kernel
# ---------------------------------------------------------------------------
def _make_medrec_kernel(t_max, D):
    H = 2 * D          # per-encoder hidden
    H2 = 2 * H         # fused hidden [h1 | h2]  (128 lanes for D=32)
    H4 = 4 * H
    H6 = 6 * H

    def kernel(t_ref,                                # SMEM: [T] int32
               m_ref, hist_ref, ps_ref, wenc_ref,    # activations (bf16)
               wm_ref, bih_ref, whh_ref, bhh_ref,    # fused GRU weights
               wq_ref, bq_ref, wqg_ref, bqg_ref,     # query / fused gate+Wo1_q
               wo1f_ref, wo2_ref, bo2_ref,           # output MLP
               out_ref):
        f32 = jnp.float32
        bf16 = jnp.bfloat16
        T_val = t_ref[0]

        # external `enc`: sigmoid-linear, then hard >0.5 mask-multiply.
        # TODO(synk): `enc` is an external module in the reference; modeled as
        #             a deterministic sigmoid-linear here.
        embeds = jax.nn.sigmoid(
            jnp.dot(ps_ref[...], wenc_ref[...], preferred_element_type=f32))
        embeds = embeds * (embeds > 0.5).astype(f32)                 # (1, V2p)

        # mean_embedding + input-side gates for BOTH encoders and ALL steps,
        # in one matmul (embedding tables folded into Wm host-side).
        # Column layout: [r1|r2 | z1|z2 | n1|n2], blocks of H.
        # TODO(synk): nn.Dropout(p=0.4) treated as eval-mode identity.
        gx = (jnp.dot(m_ref[...], wm_ref[...], preferred_element_type=f32)
              + bih_ref[...])                                        # (Tmax, 6H)

        # Fused two-GRU recurrence (block-diagonal hidden weights).  Steps
        # t >= T are masked out, so h freezes at the last real admission.
        whh = whh_ref[...]                                           # bf16
        bhh = bhh_ref[...]
        h = jnp.zeros((1, H2), f32)
        rows = []
        for t in range(t_max):                 # static unroll (8 steps)
            gh = jnp.dot(h.astype(bf16), whh, preferred_element_type=f32) + bhh
            gxt = gx[t:t + 1, :]
            rz = jax.nn.sigmoid(gxt[:, :H4] + gh[:, :H4])            # (1, 4H)
            r = rz[:, :H2]
            z = rz[:, H2:H4]
            n = jnp.tanh(gxt[:, H4:H6] + r * gh[:, H4:H6])
            h_new = (1.0 - z) * n + z * h
            keep = (t < T_val).astype(f32)
            h = keep * h_new + (1.0 - keep) * h
            rows.append(h)
        rep = jnp.concatenate(rows, axis=0)    # (Tmax, H2) == one (8,128) vreg

        # queries = Linear(ReLU(rep)).  Since h is frozen after step T-1, the
        # last row of rep equals h_{T-1}, so queries[-1] == queries[T-1].
        queries = (jnp.dot(jax.nn.relu(rep).astype(bf16), wq_ref[...],
                           preferred_element_type=f32) + bq_ref[...])  # (Tmax, D)
        query = queries[t_max - 1:t_max, :]                            # (1, D)

        # Fused [Wo1_q | Wg] matmul on relu(query): one MXU op gives both the
        # hmid query-part (cols :2D, bias bo1 folded) and the gate logit
        # (col 2D, bias bg folded).
        qpart = (jnp.dot(jax.nn.relu(query).astype(bf16), wqg_ref[...],
                         preferred_element_type=f32) + bqg_ref[...])   # (1, Wqg_w)
        gate_h = jax.nn.sigmoid(qpart[:, 2 * D:2 * D + 1])             # (1, 1)

        # History attention: masked softmax over real history columns
        # (cols >= T-1, including the query's own row, are masked out).
        s = jax.lax.dot_general(query, queries, (((1,), (1,)), ((), ())),
                                preferred_element_type=f32)            # (1, Tmax)
        col = jax.lax.broadcasted_iota(jnp.int32, (1, t_max), 1)
        s = jnp.where(col < T_val - 1, s, -1e30)
        s = s - jnp.max(s, axis=-1, keepdims=True)
        p = jnp.exp(s)
        w = p * pl.reciprocal(jnp.sum(p, axis=-1, keepdims=True), approx=True)
        fact2 = jnp.dot(w.astype(bf16), hist_ref[...],
                        preferred_element_type=f32)                    # (1, V2p)

        gated = gate_h * fact2 + (1.0 - gate_h) * embeds
        has_hist = (T_val > 1).astype(f32)
        fact1 = has_hist * gated + (1.0 - has_hist) * embeds

        # output MLP (Wo1 pre-split: query part already in qpart).
        hmid = jax.nn.relu(
            qpart[:, :2 * D]
            + jnp.dot(jax.nn.relu(fact1).astype(bf16), wo1f_ref[...],
                      preferred_element_type=f32))                     # (1, 2D)
        out_ref[...] = (jnp.dot(hmid.astype(bf16), wo2_ref[...],
                                preferred_element_type=f32) + bo2_ref[...])
    return kernel


@functools.lru_cache(maxsize=None)
def _build_medrec_fn(t_max, vin_p, v2p, pp, D):
    """Cached, jitted pallas_call -- one compile serves every admission count."""
    kernel = _make_medrec_kernel(t_max, D)
    vmem = pl.BlockSpec(memory_space=pltpu.MemorySpace.VMEM)
    smem = pl.BlockSpec(memory_space=pltpu.MemorySpace.SMEM)
    call = pl.pallas_call(
        kernel,
        out_shape=jax.ShapeDtypeStruct((1, v2p), jnp.float32),
        in_specs=[smem] + [vmem] * 15,
        out_specs=vmem,
    )
    return jax.jit(call)


# ---------------------------------------------------------------------------
# Parameters (deterministic; embeddings uniform(-0.1, 0.1) per init_weights,
# everything else small uniform as a synthetic init).
# ---------------------------------------------------------------------------
def init_params(key, vocab_size, emb_dim, patient_dim):
    D = emb_dim
    H = 2 * D
    V0, V1, V2 = vocab_size
    ks = jax.random.split(key, 20)
    u = lambda k, shape, s=0.1: jax.random.uniform(k, shape, jnp.float32, -s, s)
    return dict(
        E0=u(ks[0], (V0, D)),                 # embeddings[0].weight
        E1=u(ks[1], (V1, D)),                 # embeddings[1].weight
        Wih0=u(ks[2], (3, D, H)), Whh0=u(ks[3], (3, H, H)),
        bih0=u(ks[4], (3, H)),    bhh0=u(ks[5], (3, H)),
        Wih1=u(ks[6], (3, D, H)), Whh1=u(ks[7], (3, H, H)),
        bih1=u(ks[8], (3, H)),    bhh1=u(ks[9], (3, H)),
        Wq=u(ks[10], (4 * D, D)), bq=u(ks[11], (1, D)),           # query Linear
        Wg=u(ks[12], (D, 1)),     bg=u(ks[13], (1, 1)),           # gate_trans
        Wo1=u(ks[14], (D + V2, 2 * D)), bo1=u(ks[15], (1, 2 * D)),
        Wo2=u(ks[16], (2 * D, V2)),     bo2=u(ks[17], (1, V2)),
        W_enc=u(ks[18], (patient_dim, V2), 1.0),                  # external `enc`
        inter=u(ks[19], (1,)),                                    # unused in forward
    )


def prepare_fused_params(params, vocab_size, emb_dim, patient_dim):
    """Host-side, one-time weight fusion / padding / bf16 cast."""
    D = emb_dim
    H = 2 * D
    V0, V1, V2 = vocab_size
    vin_p = _round_up(V0 + V1, 128)
    v2p = _round_up(V2, 128)
    pp = _round_up(patient_dim, 128)

    E0 = np.asarray(params["E0"], np.float32)
    E1 = np.asarray(params["E1"], np.float32)
    Wih0 = np.asarray(params["Wih0"], np.float32)
    Wih1 = np.asarray(params["Wih1"], np.float32)
    Whh0 = np.asarray(params["Whh0"], np.float32)
    Whh1 = np.asarray(params["Whh1"], np.float32)
    bih0 = np.asarray(params["bih0"], np.float32)
    bih1 = np.asarray(params["bih1"], np.float32)
    bhh0 = np.asarray(params["bhh0"], np.float32)
    bhh1 = np.asarray(params["bhh1"], np.float32)

    # Column layout: 6 blocks of width H -> [r1|r2 | z1|z2 | n1|n2].
    Wih_A = np.zeros((D, 6 * H), np.float32)        # encoder-0 input weights
    Wih_B = np.zeros((D, 6 * H), np.float32)        # encoder-1 input weights
    Whh_blk = np.zeros((2 * H, 6 * H), np.float32)  # block-diag hidden weights
    bih_cat = np.zeros((1, 6 * H), np.float32)
    bhh_cat = np.zeros((1, 6 * H), np.float32)
    for g in range(3):                              # g: 0=r, 1=z, 2=n
        c0 = (2 * g + 0) * H
        c1 = (2 * g + 1) * H
        Wih_A[:, c0:c0 + H] = Wih0[g]
        Wih_B[:, c1:c1 + H] = Wih1[g]
        Whh_blk[0:H, c0:c0 + H] = Whh0[g]
        Whh_blk[H:2 * H, c1:c1 + H] = Whh1[g]
        bih_cat[0, c0:c0 + H] = bih0[g]
        bih_cat[0, c1:c1 + H] = bih1[g]
        bhh_cat[0, c0:c0 + H] = bhh0[g]
        bhh_cat[0, c1:c1 + H] = bhh1[g]

    # Fold embedding tables into the input-gate weights:
    # gx = [m1|m2] @ [[E0 @ Wih_A], [E1 @ Wih_B]] + bih
    Wm = np.zeros((vin_p, 6 * H), np.float32)
    Wm[:V0] = E0 @ Wih_A
    Wm[V0:V0 + V1] = E1 @ Wih_B

    # Fuse Wo1's query part with Wg's gate column (bias bo1/bg fused too).
    Wo1 = np.asarray(params["Wo1"], np.float32)           # (D+V2, 2D)
    Wg = np.asarray(params["Wg"], np.float32)             # (D, 1)
    bo1 = np.asarray(params["bo1"], np.float32)
    bg = np.asarray(params["bg"], np.float32)
    wqg_w = _round_up(2 * D + 1, 128)
    Wqg = np.zeros((D, wqg_w), np.float32)
    Wqg[:, :2 * D] = Wo1[:D]
    Wqg[:, 2 * D:2 * D + 1] = Wg
    bqg = np.zeros((1, wqg_w), np.float32)
    bqg[0, :2 * D] = bo1[0]
    bqg[0, 2 * D] = bg[0, 0]

    Wo1_f = np.zeros((v2p, 2 * D), np.float32)
    Wo1_f[:V2] = Wo1[D:]
    Wo2 = np.zeros((2 * D, v2p), np.float32)
    Wo2[:, :V2] = np.asarray(params["Wo2"], np.float32)
    bo2 = np.zeros((1, v2p), np.float32)
    bo2[0, :V2] = np.asarray(params["bo2"], np.float32)[0]

    Wenc = np.zeros((pp, v2p), np.float32)
    Wenc[:patient_dim, :V2] = np.asarray(params["W_enc"], np.float32)

    bf = lambda a: jnp.asarray(a, jnp.bfloat16)
    f32 = lambda a: jnp.asarray(np.asarray(a, np.float32))
    return dict(
        Wm=bf(Wm), bih=f32(bih_cat), Whh=bf(Whh_blk), bhh=f32(bhh_cat),
        Wq=bf(params["Wq"]), bq=f32(params["bq"]),
        Wqg=bf(Wqg), bqg=f32(bqg),
        Wo1_f=bf(Wo1_f), Wo2=bf(Wo2), bo2=f32(bo2),
        Wenc=bf(Wenc),
        dims=dict(vin_p=vin_p, v2p=v2p, pp=pp),
    )


def medrec_forward(fused, adm_codes, patient_step, vocab_size, emb_dim,
                   patient_dim):
    V0, V1, V2 = vocab_size
    dims = fused["dims"]
    vin_p, v2p, pp = dims["vin_p"], dims["v2p"], dims["pp"]
    T = len(adm_codes)
    assert 1 <= T <= T_MAX, f"supports up to {T_MAX} admissions, got {T}"

    # Fused normalized multi-hot (diag | proc) rows and med-history multi-hot,
    # built directly at lane-padded width and fixed T_MAX sublane height.
    m = np.zeros((T_MAX, vin_p), np.float32)
    hist = np.zeros((T_MAX, v2p), np.float32)
    for t, adm in enumerate(adm_codes):
        c0 = np.asarray(adm[0], np.int64)
        c1 = np.asarray(adm[1], np.int64)
        np.add.at(m[t], c0, 1.0 / len(c0))
        np.add.at(m[t], V0 + c1, 1.0 / len(c1))
        if t < T - 1:
            hist[t, np.asarray(adm[2], np.int64)] = 1.0

    ps = np.zeros((1, pp), np.float32)
    ps[0, :patient_dim] = np.asarray(patient_step, np.float32)

    fn = _build_medrec_fn(T_MAX, vin_p, v2p, pp, emb_dim)
    out_pad = fn(jnp.asarray([T], jnp.int32),
                 jnp.asarray(m, jnp.bfloat16),
                 jnp.asarray(hist, jnp.bfloat16),
                 jnp.asarray(ps, jnp.bfloat16),
                 fused["Wenc"], fused["Wm"], fused["bih"],
                 fused["Whh"], fused["bhh"],
                 fused["Wq"], fused["bq"], fused["Wqg"], fused["bqg"],
                 fused["Wo1_f"], fused["Wo2"], fused["bo2"])
    return out_pad[:, :V2]


if __name__ == "__main__":
    emb_dim = 32                      # D; GRU hidden = 2D = 64; fused h = 128 lanes
    vocab_size = (32, 40, 48)         # (diag, proc, med)
    patient_dim = 16                  # feature size consumed by external `enc`

    key = jax.random.PRNGKey(0)
    k_params, k_step = jax.random.split(key)
    params = init_params(k_params, vocab_size, emb_dim, patient_dim)
    fused = prepare_fused_params(params, vocab_size, emb_dim, patient_dim)

    # 3 admissions: (diag codes, proc codes, med codes) -- deterministic lists
    adm_codes = [
        ([1, 5, 7], [2, 3], [4, 10, 11]),
        ([0, 2, 9, 30], [8, 1, 5], [6, 20]),
        ([4, 12, 4], [0], [1, 2, 3]),
    ]
    patient_step = jax.random.normal(k_step, (patient_dim,), dtype=jnp.float32)

    out = medrec_forward(fused, adm_codes, patient_step, vocab_size, emb_dim,
                         patient_dim)
    out = jax.block_until_ready(out)

    assert out.shape == (1, vocab_size[2]), out.shape
    assert bool(jnp.all(jnp.isfinite(out)))

    # Same compiled kernel also handles the no-history (T=1) path.
    out1 = medrec_forward(fused, adm_codes[:1], patient_step, vocab_size,
                          emb_dim, patient_dim)
    out1 = jax.block_until_ready(out1)
    assert out1.shape == (1, vocab_size[2]) and bool(jnp.all(jnp.isfinite(out1)))

    print("KERNEL_OK")
</pallas_src>

<mosaic_0001>
module attributes {stable_mosaic.version = 11 : i64} {
  func.func @kernel(%arg0: memref<1xi32, #tpu.memory_space<smem>>, %arg1: memref<8x128xbf16, #tpu.memory_space<vmem>>, %arg2: memref<8x128xbf16, #tpu.memory_space<vmem>>, %arg3: memref<1x128xbf16, #tpu.memory_space<vmem>>, %arg4: memref<128x128xbf16, #tpu.memory_space<vmem>>, %arg5: memref<128x384xbf16, #tpu.memory_space<vmem>>, %arg6: memref<1x384xf32, #tpu.memory_space<vmem>>, %arg7: memref<128x384xbf16, #tpu.memory_space<vmem>>, %arg8: memref<1x384xf32, #tpu.memory_space<vmem>>, %arg9: memref<128x32xbf16, #tpu.memory_space<vmem>>, %arg10: memref<1x32xf32, #tpu.memory_space<vmem>>, %arg11: memref<32x128xbf16, #tpu.memory_space<vmem>>, %arg12: memref<1x128xf32, #tpu.memory_space<vmem>>, %arg13: memref<128x64xbf16, #tpu.memory_space<vmem>>, %arg14: memref<64x128xbf16, #tpu.memory_space<vmem>>, %arg15: memref<1x128xf32, #tpu.memory_space<vmem>>, %arg16: memref<1x128xf32, #tpu.memory_space<vmem>>) attributes {dimension_semantics = [], scalar_prefetch = 0 : i64, scratch_operands = 0 : i64, tpu.core_type = #tpu.core_type<tc>} {
    %c0 = arith.constant 0 : index
    %0 = memref.load %arg0[%c0] : memref<1xi32, #tpu.memory_space<smem>>
    %c0_0 = arith.constant 0 : index
    %c0_1 = arith.constant 0 : index
    %1 = vector.load %arg3[%c0_0, %c0_1] : memref<1x128xbf16, #tpu.memory_space<vmem>>, vector<1x128xbf16>
    %c0_2 = arith.constant 0 : index
    %c0_3 = arith.constant 0 : index
    %2 = vector.load %arg4[%c0_2, %c0_3] : memref<128x128xbf16, #tpu.memory_space<vmem>>, vector<128x128xbf16>
    %cst = arith.constant dense<0.000000e+00> : vector<1x128xf32>
    %3 = tpu.matmul %1, %2, %cst {dimension_numbers = #tpu.dot_dimension_numbers<[1], [0], [0], [1], [0, 0, 1, 1], [], []>} : vector<1x128xbf16>, vector<128x128xbf16>, vector<1x128xf32> -> vector<1x128xf32>
    %4 = arith.negf %3 : vector<1x128xf32>
    %5 = math.exp %4 : vector<1x128xf32>
    %cst_4 = arith.constant 1.000000e+00 : f32
    %6 = vector.broadcast %cst_4 : f32 to vector<1x128xf32>
    %7 = arith.addf %6, %5 : vector<1x128xf32>
    %8 = arith.divf %6, %7 : vector<1x128xf32>
    %cst_5 = arith.constant 5.000000e-01 : f32
    %9 = vector.broadcast %cst_5 : f32 to vector<1x128xf32>
    %10 = arith.cmpf ogt, %8, %9 : vector<1x128xf32>
    %11 = arith.extui %10 : vector<1x128xi1> to vector<1x128xi32>
    %12 = arith.sitofp %11 : vector<1x128xi32> to vector<1x128xf32>
    %13 = arith.mulf %8, %12 : vector<1x128xf32>
    %c0_6 = arith.constant 0 : index
    %c0_7 = arith.constant 0 : index
    %14 = vector.load %arg1[%c0_6, %c0_7] : memref<8x128xbf16, #tpu.memory_space<vmem>>, vector<8x128xbf16>
    %c0_8 = arith.constant 0 : index
    %c0_9 = arith.constant 0 : index
    %15 = vector.load %arg5[%c0_8, %c0_9] : memref<128x384xbf16, #tpu.memory_space<vmem>>, vector<128x384xbf16>
    %cst_10 = arith.constant dense<0.000000e+00> : vector<8x384xf32>
    %16 = tpu.matmul %14, %15, %cst_10 {dimension_numbers = #tpu.dot_dimension_numbers<[1], [0], [0], [1], [0, 0, 1, 1], [], []>} : vector<8x128xbf16>, vector<128x384xbf16>, vector<8x384xf32> -> vector<8x384xf32>
    %c0_11 = arith.constant 0 : index
    %c0_12 = arith.constant 0 : index
    %17 = vector.load %arg6[%c0_11, %c0_12] : memref<1x384xf32, #tpu.memory_space<vmem>>, vector<1x384xf32>
    %18 = vector.broadcast %17 : vector<1x384xf32> to vector<8x384xf32>
    %19 = arith.addf %16, %18 : vector<8x384xf32>
    %c0_13 = arith.constant 0 : index
    %c0_14 = arith.constant 0 : index
    %20 = vector.load %arg7[%c0_13, %c0_14] : memref<128x384xbf16, #tpu.memory_space<vmem>>, vector<128x384xbf16>
    %c0_15 = arith.constant 0 : index
    %c0_16 = arith.constant 0 : index
    %21 = vector.load %arg8[%c0_15, %c0_16] : memref<1x384xf32, #tpu.memory_space<vmem>>, vector<1x384xf32>
    %cst_17 = arith.constant 0.000000e+00 : f32
    %22 = vector.broadcast %cst_17 : f32 to vector<1x128xf32>
    %23 = arith.truncf %22 : vector<1x128xf32> to vector<1x128xbf16>
    %cst_18 = arith.constant dense<0.000000e+00> : vector<1x384xf32>
    %24 = tpu.matmul %23, %20, %cst_18 {dimension_numbers = #tpu.dot_dimension_numbers<[1], [0], [0], [1], [0, 0, 1, 1], [], []>} : vector<1x128xbf16>, vector<128x384xbf16>, vector<1x384xf32> -> vector<1x384xf32>
    %25 = arith.addf %24, %21 : vector<1x384xf32>
    %26 = vector.extract_strided_slice %19 {offsets = [0, 0], sizes = [1, 384], strides = [1, 1]} : vector<8x384xf32> to vector<1x384xf32>
    %27 = vector.extract_strided_slice %26 {offsets = [0, 0], sizes = [1, 256], strides = [1, 1]} : vector<1x384xf32> to vector<1x256xf32>
    %28 = vector.extract_strided_slice %25 {offsets = [0, 0], sizes = [1, 256], strides = [1, 1]} : vector<1x384xf32> to vector<1x256xf32>
    %29 = arith.addf %27, %28 : vector<1x256xf32>
    %30 = arith.negf %29 : vector<1x256xf32>
    %31 = math.exp %30 : vector<1x256xf32>
    %cst_19 = arith.constant 1.000000e+00 : f32
    %32 = vector.broadcast %cst_19 : f32 to vector<1x256xf32>
    %33 = arith.addf %32, %31 : vector<1x256xf32>
    %34 = arith.divf %32, %33 : vector<1x256xf32>
    %35 = vector.extract_strided_slice %34 {offsets = [0, 0], sizes = [1, 128], strides = [1, 1]} : vector<1x256xf32> to vector<1x128xf32>
    %36 = vector.extract_strided_slice %34 {offsets = [0, 128], sizes = [1, 128], strides = [1, 1]} : vector<1x256xf32> to vector<1x128xf32>
    %37 = vector.extract_strided_slice %26 {offsets = [0, 256], sizes = [1, 128], strides = [1, 1]} : vector<1x384xf32> to vector<1x128xf32>
    %38 = vector.extract_strided_slice %25 {offsets = [0, 256], sizes = [1, 128], strides = [1, 1]} : vector<1x384xf32> to vector<1x128xf32>
    %39 = arith.mulf %35, %38 : vector<1x128xf32>
    %40 = arith.addf %37, %39 : vector<1x128xf32>
    %41 = math.tanh %40 : vector<1x128xf32>
    %cst_20 = arith.constant 1.000000e+00 : f32
    %42 = vector.broadcast %cst_20 : f32 to vector<1x128xf32>
    %43 = arith.subf %42, %36 : vector<1x128xf32>
    %44 = arith.mulf %43, %41 : vector<1x128xf32>
    %45 = arith.mulf %36, %22 : vector<1x128xf32>
    %46 = arith.addf %44, %45 : vector<1x128xf32>
    %c0_i32 = arith.constant 0 : i32
    %47 = arith.cmpi sgt, %0, %c0_i32 : i32
    %48 = arith.extui %47 : i1 to i32
    %49 = arith.sitofp %48 : i32 to f32
    %50 = vector.broadcast %49 : f32 to vector<1x128xf32>
    %51 = arith.mulf %50, %46 : vector<1x128xf32>
    %cst_21 = arith.constant 1.000000e+00 : f32
    %52 = arith.subf %cst_21, %49 : f32
    %53 = vector.broadcast %52 : f32 to vector<1x128xf32>
    %54 = arith.mulf %53, %22 : vector<1x128xf32>
    %55 = arith.addf %51, %54 : vector<1x128xf32>
    %56 = arith.truncf %55 : vector<1x128xf32> to vector<1x128xbf16>
    %cst_22 = arith.constant dense<0.000000e+00> : vector<1x384xf32>
    %57 = tpu.matmul %56, %20, %cst_22 {dimension_numbers = #tpu.dot_dimension_numbers<[1], [0], [0], [1], [0, 0, 1, 1], [], []>} : vector<1x128xbf16>, vector<128x384xbf16>, vector<1x384xf32> -> vector<1x384xf32>
    %58 = arith.addf %57, %21 : vector<1x384xf32>
    %59 = vector.extract_strided_slice %19 {offsets = [1, 0], sizes = [1, 384], strides = [1, 1]} : vector<8x384xf32> to vector<1x384xf32>
    %60 = vector.extract_strided_slice %59 {offsets = [0, 0], sizes = [1, 256], strides = [1, 1]} : vector<1x384xf32> to vector<1x256xf32>
    %61 = vector.extract_strided_slice %58 {offsets = [0, 0], sizes = [1, 256], strides = [1, 1]} : vector<1x384xf32> to vector<1x256xf32>
    %62 = arith.addf %60, %61 : vector<1x256xf32>
    %63 = arith.negf %62 : vector<1x256xf32>
    %64 = math.exp %63 : vector<1x256xf32>
    %cst_23 = arith.constant 1.000000e+00 : f32
    %65 = vector.broadcast %cst_23 : f32 to vector<1x256xf32>
    %66 = arith.addf %65, %64 : vector<1x256xf32>
    %67 = arith.divf %65, %66 : vector<1x256xf32>
    %68 = vector.extract_strided_slice %67 {offsets = [0, 0], sizes = [1, 128], strides = [1, 1]} : vector<1x256xf32> to vector<1x128xf32>
    %69 = vector.extract_strided_slice %67 {offsets = [0, 128], sizes = [1, 128], strides = [1, 1]} : vector<1x256xf32> to vector<1x128xf32>
    %70 = vector.extract_strided_slice %59 {offsets = [0, 256], sizes = [1, 128], strides = [1, 1]} : vector<1x384xf32> to vector<1x128xf32>
    %71 = vector.extract_strided_slice %58 {offsets = [0, 256], sizes = [1, 128], strides = [1, 1]} : vector<1x384xf32> to vector<1x128xf32>
    %72 = arith.mulf %68, %71 : vector<1x128xf32>
    %73 = arith.addf %70, %72 : vector<1x128xf32>
    %74 = math.tanh %73 : vector<1x128xf32>
    %cst_24 = arith.constant 1.000000e+00 : f32
    %75 = vector.broadcast %cst_24 : f32 to vector<1x128xf32>
    %76 = arith.subf %75, %69 : vector<1x128xf32>
    %77 = arith.mulf %76, %74 : vector<1x128xf32>
    %78 = arith.mulf %69, %55 : vector<1x128xf32>
    %79 = arith.addf %77, %78 : vector<1x128xf32>
    %c1_i32 = arith.constant 1 : i32
    %80 = arith.cmpi sgt, %0, %c1_i32 : i32
    %81 = arith.extui %80 : i1 to i32
    %82 = arith.sitofp %81 : i32 to f32
    %83 = vector.broadcast %82 : f32 to vector<1x128xf32>
    %84 = arith.mulf %83, %79 : vector<1x128xf32>
    %cst_25 = arith.constant 1.000000e+00 : f32
    %85 = arith.subf %cst_25, %82 : f32
    %86 = vector.broadcast %85 : f32 to vector<1x128xf32>
    %87 = arith.mulf %86, %55 : vector<1x128xf32>
    %88 = arith.addf %84, %87 : vector<1x128xf32>
    %89 = arith.truncf %88 : vector<1x128xf32> to vector<1x128xbf16>
    %cst_26 = arith.constant dense<0.000000e+00> : vector<1x384xf32>
    %90 = tpu.matmul %89, %20, %cst_26 {dimension_numbers = #tpu.dot_dimension_numbers<[1], [0], [0], [1], [0, 0, 1, 1], [], []>} : vector<1x128xbf16>, vector<128x384xbf16>, vector<1x384xf32> -> vector<1x384xf32>
    %91 = arith.addf %90, %21 : vector<1x384xf32>
    %92 = vector.extract_strided_slice %19 {offsets = [2, 0], sizes = [1, 384], strides = [1, 1]} : vector<8x384xf32> to vector<1x384xf32>
    %93 = vector.extract_strided_slice %92 {offsets = [0, 0], sizes = [1, 256], strides = [1, 1]} : vector<1x384xf32> to vector<1x256xf32>
    %94 = vector.extract_strided_slice %91 {offsets = [0, 0], sizes = [1, 256], strides = [1, 1]} : vector<1x384xf32> to vector<1x256xf32>
    %95 = arith.addf %93, %94 : vector<1x256xf32>
    %96 = arith.negf %95 : vector<1x256xf32>
    %97 = math.exp %96 : vector<1x256xf32>
    %cst_27 = arith.constant 1.000000e+00 : f32
    %98 = vector.broadcast %cst_27 : f32 to vector<1x256xf32>
    %99 = arith.addf %98, %97 : vector<1x256xf32>
    %100 = arith.divf %98, %99 : vector<1x256xf32>
    %101 = vector.extract_strided_slice %100 {offsets = [0, 0], sizes = [1, 128], strides = [1, 1]} : vector<1x256xf32> to vector<1x128xf32>
    %102 = vector.extract_strided_slice %100 {offsets = [0, 128], sizes = [1, 128], strides = [1, 1]} : vector<1x256xf32> to vector<1x128xf32>
    %103 = vector.extract_strided_slice %92 {offsets = [0, 256], sizes = [1, 128], strides = [1, 1]} : vector<1x384xf32> to vector<1x128xf32>
    %104 = vector.extract_strided_slice %91 {offsets = [0, 256], sizes = [1, 128], strides = [1, 1]} : vector<1x384xf32> to vector<1x128xf32>
    %105 = arith.mulf %101, %104 : vector<1x128xf32>
    %106 = arith.addf %103, %105 : vector<1x128xf32>
    %107 = math.tanh %106 : vector<1x128xf32>
    %cst_28 = arith.constant 1.000000e+00 : f32
    %108 = vector.broadcast %cst_28 : f32 to vector<1x128xf32>
    %109 = arith.subf %108, %102 : vector<1x128xf32>
    %110 = arith.mulf %109, %107 : vector<1x128xf32>
    %111 = arith.mulf %102, %88 : vector<1x128xf32>
    %112 = arith.addf %110, %111 : vector<1x128xf32>
    %c2_i32 = arith.constant 2 : i32
    %113 = arith.cmpi sgt, %0, %c2_i32 : i32
    %114 = arith.extui %113 : i1 to i32
    %115 = arith.sitofp %114 : i32 to f32
    %116 = vector.broadcast %115 : f32 to vector<1x128xf32>
    %117 = arith.mulf %116, %112 : vector<1x128xf32>
    %cst_29 = arith.constant 1.000000e+00 : f32
    %118 = arith.subf %cst_29, %115 : f32
    %119 = vector.broadcast %118 : f32 to vector<1x128xf32>
    %120 = arith.mulf %119, %88 : vector<1x128xf32>
    %121 = arith.addf %117, %120 : vector<1x128xf32>
    %122 = arith.truncf %121 : vector<1x128xf32> to vector<1x128xbf16>
    %cst_30 = arith.constant dense<0.000000e+00> : vector<1x384xf32>
    %123 = tpu.matmul %122, %20, %cst_30 {dimension_numbers = #tpu.dot_dimension_numbers<[1], [0], [0], [1], [0, 0, 1, 1], [], []>} : vector<1x128xbf16>, vector<128x384xbf16>, vector<1x384xf32> -> vector<1x384xf32>
    %124 = arith.addf %123, %21 : vector<1x384xf32>
    %125 = vector.extract_strided_slice %19 {offsets = [3, 0], sizes = [1, 384], strides = [1, 1]} : vector<8x384xf32> to vector<1x384xf32>
    %126 = vector.extract_strided_slice %125 {offsets = [0, 0], sizes = [1, 256], strides = [1, 1]} : vector<1x384xf32> to vector<1x256xf32>
    %127 = vector.extract_strided_slice %124 {offsets = [0, 0], sizes = [1, 256], strides = [1, 1]} : vector<1x384xf32> to vector<1x256xf32>
    %128 = arith.addf %126, %127 : vector<1x256xf32>
    %129 = arith.negf %128 : vector<1x256xf32>
    %130 = math.exp %129 : vector<1x256xf32>
    %cst_31 = arith.constant 1.000000e+00 : f32
    %131 = vector.broadcast %cst_31 : f32 to vector<1x256xf32>
    %132 = arith.addf %131, %130 : vector<1x256xf32>
    %133 = arith.divf %131, %132 : vector<1x256xf32>
    %134 = vector.extract_strided_slice %133 {offsets = [0, 0], sizes = [1, 128], strides = [1, 1]} : vector<1x256xf32> to vector<1x128xf32>
    %135 = vector.extract_strided_slice %133 {offsets = [0, 128], sizes = [1, 128], strides = [1, 1]} : vector<1x256xf32> to vector<1x128xf32>
    %136 = vector.extract_strided_slice %125 {offsets = [0, 256], sizes = [1, 128], strides = [1, 1]} : vector<1x384xf32> to vector<1x128xf32>
    %137 = vector.extract_strided_slice %124 {offsets = [0, 256], sizes = [1, 128], strides = [1, 1]} : vector<1x384xf32> to vector<1x128xf32>
    %138 = arith.mulf %134, %137 : vector<1x128xf32>
    %139 = arith.addf %136, %138 : vector<1x128xf32>
    %140 = math.tanh %139 : vector<1x128xf32>
    %cst_32 = arith.constant 1.000000e+00 : f32
    %141 = vector.broadcast %cst_32 : f32 to vector<1x128xf32>
    %142 = arith.subf %141, %135 : vector<1x128xf32>
    %143 = arith.mulf %142, %140 : vector<1x128xf32>
    %144 = arith.mulf %135, %121 : vector<1x128xf32>
    %145 = arith.addf %143, %144 : vector<1x128xf32>
    %c3_i32 = arith.constant 3 : i32
    %146 = arith.cmpi sgt, %0, %c3_i32 : i32
    %147 = arith.extui %146 : i1 to i32
    %148 = arith.sitofp %147 : i32 to f32
    %149 = vector.broadcast %148 : f32 to vector<1x128xf32>
    %150 = arith.mulf %149, %145 : vector<1x128xf32>
    %cst_33 = arith.constant 1.000000e+00 : f32
    %151 = arith.subf %cst_33, %148 : f32
    %152 = vector.broadcast %151 : f32 to vector<1x128xf32>
    %153 = arith.mulf %152, %121 : vector<1x128xf32>
    %154 = arith.addf %150, %153 : vector<1x128xf32>
    %155 = arith.truncf %154 : vector<1x128xf32> to vector<1x128xbf16>
    %cst_34 = arith.constant dense<0.000000e+00> : vector<1x384xf32>
    %156 = tpu.matmul %155, %20, %cst_34 {dimension_numbers = #tpu.dot_dimension_numbers<[1], [0], [0], [1], [0, 0, 1, 1], [], []>} : vector<1x128xbf16>, vector<128x384xbf16>, vector<1x384xf32> -> vector<1x384xf32>
    %157 = arith.addf %156, %21 : vector<1x384xf32>
    %158 = vector.extract_strided_slice %19 {offsets = [4, 0], sizes = [1, 384], strides = [1, 1]} : vector<8x384xf32> to vector<1x384xf32>
    %159 = vector.extract_strided_slice %158 {offsets = [0, 0], sizes = [1, 256], strides = [1, 1]} : vector<1x384xf32> to vector<1x256xf32>
    %160 = vector.extract_strided_slice %157 {offsets = [0, 0], sizes = [1, 256], strides = [1, 1]} : vector<1x384xf32> to vector<1x256xf32>
    %161 = arith.addf %159, %160 : vector<1x256xf32>
    %162 = arith.negf %161 : vector<1x256xf32>
    %163 = math.exp %162 : vector<1x256xf32>
    %cst_35 = arith.constant 1.000000e+00 : f32
    %164 = vector.broadcast %cst_35 : f32 to vector<1x256xf32>
    %165 = arith.addf %164, %163 : vector<1x256xf32>
    %166 = arith.divf %164, %165 : vector<1x256xf32>
    %167 = vector.extract_strided_slice %166 {offsets = [0, 0], sizes = [1, 128], strides = [1, 1]} : vector<1x256xf32> to vector<1x128xf32>
    %168 = vector.extract_strided_slice %166 {offsets = [0, 128], sizes = [1, 128], strides = [1, 1]} : vector<1x256xf32> to vector<1x128xf32>
    %169 = vector.extract_strided_slice %158 {offsets = [0, 256], sizes = [1, 128], strides = [1, 1]} : vector<1x384xf32> to vector<1x128xf32>
    %170 = vector.extract_strided_slice %157 {offsets = [0, 256], sizes = [1, 128], strides = [1, 1]} : vector<1x384xf32> to vector<1x128xf32>
    %171 = arith.mulf %167, %170 : vector<1x128xf32>
    %172 = arith.addf %169, %171 : vector<1x128xf32>
    %173 = math.tanh %172 : vector<1x128xf32>
    %cst_36 = arith.constant 1.000000e+00 : f32
    %174 = vector.broadcast %cst_36 : f32 to vector<1x128xf32>
    %175 = arith.subf %174, %168 : vector<1x128xf32>
    %176 = arith.mulf %175, %173 : vector<1x128xf32>
    %177 = arith.mulf %168, %154 : vector<1x128xf32>
    %178 = arith.addf %176, %177 : vector<1x128xf32>
    %c4_i32 = arith.constant 4 : i32
    %179 = arith.cmpi sgt, %0, %c4_i32 : i32
    %180 = arith.extui %179 : i1 to i32
    %181 = arith.sitofp %180 : i32 to f32
    %182 = vector.broadcast %181 : f32 to vector<1x128xf32>
    %183 = arith.mulf %182, %178 : vector<1x128xf32>
    %cst_37 = arith.constant 1.000000e+00 : f32
    %184 = arith.subf %cst_37, %181 : f32
    %185 = vector.broadcast %184 : f32 to vector<1x128xf32>
    %186 = arith.mulf %185, %154 : vector<1x128xf32>
    %187 = arith.addf %183, %186 : vector<1x128xf32>
    %188 = arith.truncf %187 : vector<1x128xf32> to vector<1x128xbf16>
    %cst_38 = arith.constant dense<0.000000e+00> : vector<1x384xf32>
    %189 = tpu.matmul %188, %20, %cst_38 {dimension_numbers = #tpu.dot_dimension_numbers<[1], [0], [0], [1], [0, 0, 1, 1], [], []>} : vector<1x128xbf16>, vector<128x384xbf16>, vector<1x384xf32> -> vector<1x384xf32>
    %190 = arith.addf %189, %21 : vector<1x384xf32>
    %191 = vector.extract_strided_slice %19 {offsets = [5, 0], sizes = [1, 384], strides = [1, 1]} : vector<8x384xf32> to vector<1x384xf32>
    %192 = vector.extract_strided_slice %191 {offsets = [0, 0], sizes = [1, 256], strides = [1, 1]} : vector<1x384xf32> to vector<1x256xf32>
    %193 = vector.extract_strided_slice %190 {offsets = [0, 0], sizes = [1, 256], strides = [1, 1]} : vector<1x384xf32> to vector<1x256xf32>
    %194 = arith.addf %192, %193 : vector<1x256xf32>
    %195 = arith.negf %194 : vector<1x256xf32>
    %196 = math.exp %195 : vector<1x256xf32>
    %cst_39 = arith.constant 1.000000e+00 : f32
    %197 = vector.broadcast %cst_39 : f32 to vector<1x256xf32>
    %198 = arith.addf %197, %196 : vector<1x256xf32>
    %199 = arith.divf %197, %198 : vector<1x256xf32>
    %200 = vector.extract_strided_slice %199 {offsets = [0, 0], sizes = [1, 128], strides = [1, 1]} : vector<1x256xf32> to vector<1x128xf32>
    %201 = vector.extract_strided_slice %199 {offsets = [0, 128], sizes = [1, 128], strides = [1, 1]} : vector<1x256xf32> to vector<1x128xf32>
    %202 = vector.extract_strided_slice %191 {offsets = [0, 256], sizes = [1, 128], strides = [1, 1]} : vector<1x384xf32> to vector<1x128xf32>
    %203 = vector.extract_strided_slice %190 {offsets = [0, 256], sizes = [1, 128], strides = [1, 1]} : vector<1x384xf32> to vector<1x128xf32>
    %204 = arith.mulf %200, %203 : vector<1x128xf32>
    %205 = arith.addf %202, %204 : vector<1x128xf32>
    %206 = math.tanh %205 : vector<1x128xf32>
    %cst_40 = arith.constant 1.000000e+00 : f32
    %207 = vector.broadcast %cst_40 : f32 to vector<1x128xf32>
    %208 = arith.subf %207, %201 : vector<1x128xf32>
    %209 = arith.mulf %208, %206 : vector<1x128xf32>
    %210 = arith.mulf %201, %187 : vector<1x128xf32>
    %211 = arith.addf %209, %210 : vector<1x128xf32>
    %c5_i32 = arith.constant 5 : i32
    %212 = arith.cmpi sgt, %0, %c5_i32 : i32
    %213 = arith.extui %212 : i1 to i32
    %214 = arith.sitofp %213 : i32 to f32
    %215 = vector.broadcast %214 : f32 to vector<1x128xf32>
    %216 = arith.mulf %215, %211 : vector<1x128xf32>
    %cst_41 = arith.constant 1.000000e+00 : f32
    %217 = arith.subf %cst_41, %214 : f32
    %218 = vector.broadcast %217 : f32 to vector<1x128xf32>
    %219 = arith.mulf %218, %187 : vector<1x128xf32>
    %220 = arith.addf %216, %219 : vector<1x128xf32>
    %221 = arith.truncf %220 : vector<1x128xf32> to vector<1x128xbf16>
    %cst_42 = arith.constant dense<0.000000e+00> : vector<1x384xf32>
    %222 = tpu.matmul %221, %20, %cst_42 {dimension_numbers = #tpu.dot_dimension_numbers<[1], [0], [0], [1], [0, 0, 1, 1], [], []>} : vector<1x128xbf16>, vector<128x384xbf16>, vector<1x384xf32> -> vector<1x384xf32>
    %223 = arith.addf %222, %21 : vector<1x384xf32>
    %224 = vector.extract_strided_slice %19 {offsets = [6, 0], sizes = [1, 384], strides = [1, 1]} : vector<8x384xf32> to vector<1x384xf32>
    %225 = vector.extract_strided_slice %224 {offsets = [0, 0], sizes = [1, 256], strides = [1, 1]} : vector<1x384xf32> to vector<1x256xf32>
    %226 = vector.extract_strided_slice %223 {offsets = [0, 0], sizes = [1, 256], strides = [1, 1]} : vector<1x384xf32> to vector<1x256xf32>
    %227 = arith.addf %225, %226 : vector<1x256xf32>
    %228 = arith.negf %227 : vector<1x256xf32>
    %229 = math.exp %228 : vector<1x256xf32>
    %cst_43 = arith.constant 1.000000e+00 : f32
    %230 = vector.broadcast %cst_43 : f32 to vector<1x256xf32>
    %231 = arith.addf %230, %229 : vector<1x256xf32>
    %232 = arith.divf %230, %231 : vector<1x256xf32>
    %233 = vector.extract_strided_slice %232 {offsets = [0, 0], sizes = [1, 128], strides = [1, 1]} : vector<1x256xf32> to vector<1x128xf32>
    %234 = vector.extract_strided_slice %232 {offsets = [0, 128], sizes = [1, 128], strides = [1, 1]} : vector<1x256xf32> to vector<1x128xf32>
    %235 = vector.extract_strided_slice %224 {offsets = [0, 256], sizes = [1, 128], strides = [1, 1]} : vector<1x384xf32> to vector<1x128xf32>
    %236 = vector.extract_strided_slice %223 {offsets = [0, 256], sizes = [1, 128], strides = [1, 1]} : vector<1x384xf32> to vector<1x128xf32>
    %237 = arith.mulf %233, %236 : vector<1x128xf32>
    %238 = arith.addf %235, %237 : vector<1x128xf32>
    %239 = math.tanh %238 : vector<1x128xf32>
    %cst_44 = arith.constant 1.000000e+00 : f32
    %240 = vector.broadcast %cst_44 : f32 to vector<1x128xf32>
    %241 = arith.subf %240, %234 : vector<1x128xf32>
    %242 = arith.mulf %241, %239 : vector<1x128xf32>
    %243 = arith.mulf %234, %220 : vector<1x128xf32>
    %244 = arith.addf %242, %243 : vector<1x128xf32>
    %c6_i32 = arith.constant 6 : i32
    %245 = arith.cmpi sgt, %0, %c6_i32 : i32
    %246 = arith.extui %245 : i1 to i32
    %247 = arith.sitofp %246 : i32 to f32
    %248 = vector.broadcast %247 : f32 to vector<1x128xf32>
    %249 = arith.mulf %248, %244 : vector<1x128xf32>
    %cst_45 = arith.constant 1.000000e+00 : f32
    %250 = arith.subf %cst_45, %247 : f32
    %251 = vector.broadcast %250 : f32 to vector<1x128xf32>
    %252 = arith.mulf %251, %220 : vector<1x128xf32>
    %253 = arith.addf %249, %252 : vector<1x128xf32>
    %254 = arith.truncf %253 : vector<1x128xf32> to vector<1x128xbf16>
    %cst_46 = arith.constant dense<0.000000e+00> : vector<1x384xf32>
    %255 = tpu.matmul %254, %20, %cst_46 {dimension_numbers = #tpu.dot_dimension_numbers<[1], [0], [0], [1], [0, 0, 1, 1], [], []>} : vector<1x128xbf16>, vector<128x384xbf16>, vector<1x384xf32> -> vector<1x384xf32>
    %256 = arith.addf %255, %21 : vector<1x384xf32>
    %257 = vector.extract_strided_slice %19 {offsets = [7, 0], sizes = [1, 384], strides = [1, 1]} : vector<8x384xf32> to vector<1x384xf32>
    %258 = vector.extract_strided_slice %257 {offsets = [0, 0], sizes = [1, 256], strides = [1, 1]} : vector<1x384xf32> to vector<1x256xf32>
    %259 = vector.extract_strided_slice %256 {offsets = [0, 0], sizes = [1, 256], strides = [1, 1]} : vector<1x384xf32> to vector<1x256xf32>
    %260 = arith.addf %258, %259 : vector<1x256xf32>
    %261 = arith.negf %260 : vector<1x256xf32>
    %262 = math.exp %261 : vector<1x256xf32>
    %cst_47 = arith.constant 1.000000e+00 : f32
    %263 = vector.broadcast %cst_47 : f32 to vector<1x256xf32>
    %264 = arith.addf %263, %262 : vector<1x256xf32>
    %265 = arith.divf %263, %264 : vector<1x256xf32>
    %266 = vector.extract_strided_slice %265 {offsets = [0, 0], sizes = [1, 128], strides = [1, 1]} : vector<1x256xf32> to vector<1x128xf32>
    %267 = vector.extract_strided_slice %265 {offsets = [0, 128], sizes = [1, 128], strides = [1, 1]} : vector<1x256xf32> to vector<1x128xf32>
    %268 = vector.extract_strided_slice %257 {offsets = [0, 256], sizes = [1, 128], strides = [1, 1]} : vector<1x384xf32> to vector<1x128xf32>
    %269 = vector.extract_strided_slice %256 {offsets = [0, 256], sizes = [1, 128], strides = [1, 1]} : vector<1x384xf32> to vector<1x128xf32>
    %270 = arith.mulf %266, %269 : vector<1x128xf32>
    %271 = arith.addf %268, %270 : vector<1x128xf32>
    %272 = math.tanh %271 : vector<1x128xf32>
    %cst_48 = arith.constant 1.000000e+00 : f32
    %273 = vector.broadcast %cst_48 : f32 to vector<1x128xf32>
    %274 = arith.subf %273, %267 : vector<1x128xf32>
    %275 = arith.mulf %274, %272 : vector<1x128xf32>
    %276 = arith.mulf %267, %253 : vector<1x128xf32>
    %277 = arith.addf %275, %276 : vector<1x128xf32>
    %c7_i32 = arith.constant 7 : i32
    %278 = arith.cmpi sgt, %0, %c7_i32 : i32
    %279 = arith.extui %278 : i1 to i32
    %280 = arith.sitofp %279 : i32 to f32
    %281 = vector.broadcast %280 : f32 to vector<1x128xf32>
    %282 = arith.mulf %281, %277 : vector<1x128xf32>
    %cst_49 = arith.constant 1.000000e+00 : f32
    %283 = arith.subf %cst_49, %280 : f32
    %284 = vector.broadcast %283 : f32 to vector<1x128xf32>
    %285 = arith.mulf %284, %253 : vector<1x128xf32>
    %286 = arith.addf %282, %285 : vector<1x128xf32>
    %287 = tpu.concatenate %55, %88, %121, %154, %187, %220, %253, %286 in 0 : vector<1x128xf32>, vector<1x128xf32>, vector<1x128xf32>, vector<1x128xf32>, vector<1x128xf32>, vector<1x128xf32>, vector<1x128xf32>, vector<1x128xf32> -> vector<8x128xf32>
    %cst_50 = arith.constant 0.000000e+00 : f32
    %288 = vector.broadcast %cst_50 : f32 to vector<8x128xf32>
    %289 = arith.maximumf %287, %288 : vector<8x128xf32>
    %290 = arith.truncf %289 : vector<8x128xf32> to vector<8x128xbf16>
    %c0_51 = arith.constant 0 : index
    %c0_52 = arith.constant 0 : index
    %291 = vector.load %arg9[%c0_51, %c0_52] : memref<128x32xbf16, #tpu.memory_space<vmem>>, vector<128x32xbf16>
    %cst_53 = arith.constant dense<0.000000e+00> : vector<8x32xf32>
    %292 = tpu.matmul %290, %291, %cst_53 {dimension_numbers = #tpu.dot_dimension_numbers<[1], [0], [0], [1], [0, 0, 1, 1], [], []>} : vector<8x128xbf16>, vector<128x32xbf16>, vector<8x32xf32> -> vector<8x32xf32>
    %c0_54 = arith.constant 0 : index
    %c0_55 = arith.constant 0 : index
    %293 = vector.load %arg10[%c0_54, %c0_55] : memref<1x32xf32, #tpu.memory_space<vmem>>, vector<1x32xf32>
    %294 = vector.broadcast %293 : vector<1x32xf32> to vector<8x32xf32>
    %295 = arith.addf %292, %294 : vector<8x32xf32>
    %296 = vector.extract_strided_slice %295 {offsets = [7, 0], sizes = [1, 32], strides = [1, 1]} : vector<8x32xf32> to vector<1x32xf32>
    %cst_56 = arith.constant 0.000000e+00 : f32
    %297 = vector.broadcast %cst_56 : f32 to vector<1x32xf32>
    %298 = arith.maximumf %296, %297 : vector<1x32xf32>
    %299 = arith.truncf %298 : vector<1x32xf32> to vector<1x32xbf16>
    %c0_57 = arith.constant 0 : index
    %c0_58 = arith.constant 0 : index
    %300 = vector.load %arg11[%c0_57, %c0_58] : memref<32x128xbf16, #tpu.memory_space<vmem>>, vector<32x128xbf16>
    %cst_59 = arith.constant dense<0.000000e+00> : vector<1x128xf32>
    %301 = tpu.matmul %299, %300, %cst_59 {dimension_numbers = #tpu.dot_dimension_numbers<[1], [0], [0], [1], [0, 0, 1, 1], [], []>} : vector<1x32xbf16>, vector<32x128xbf16>, vector<1x128xf32> -> vector<1x128xf32>
    %c0_60 = arith.constant 0 : index
    %c0_61 = arith.constant 0 : index
    %302 = vector.load %arg12[%c0_60, %c0_61] : memref<1x128xf32, #tpu.memory_space<vmem>>, vector<1x128xf32>
    %303 = arith.addf %301, %302 : vector<1x128xf32>
    %304 = vector.extract_strided_slice %303 {offsets = [0, 64], sizes = [1, 1], strides = [1, 1]} : vector<1x128xf32> to vector<1x1xf32>
    %305 = arith.negf %304 : vector<1x1xf32>
    %306 = math.exp %305 : vector<1x1xf32>
    %cst_62 = arith.constant 1.000000e+00 : f32
    %307 = vector.broadcast %cst_62 : f32 to vector<1x1xf32>
    %308 = arith.addf %307, %306 : vector<1x1xf32>
    %309 = arith.divf %307, %308 : vector<1x1xf32>
    %cst_63 = arith.constant dense<0.000000e+00> : vector<1x8xf32>
    %310 = tpu.matmul %296, %295, %cst_63 {dimension_numbers = #tpu.dot_dimension_numbers<[1], [1], [0], [0], [0, 0, 1, 0], [], []>} : vector<1x32xf32>, vector<8x32xf32>, vector<1x8xf32> -> vector<1x8xf32>
    %311 = tpu.iota {dimensions = array<i32: 1>} : vector<1x8xi32>
    %c1_i32_64 = arith.constant 1 : i32
    %312 = arith.subi %0, %c1_i32_64 : i32
    %313 = vector.broadcast %312 : i32 to vector<1x8xi32>
    %314 = arith.cmpi slt, %311, %313 : vector<1x8xi32>
    %cst_65 = arith.constant -1.000000e+30 : f32
    %315 = vector.broadcast %cst_65 : f32 to vector<1x8xf32>
    %316 = arith.select %314, %310, %315 : vector<1x8xi1>, vector<1x8xf32>
    %cst_66 = arith.constant dense<0xFF800000> : vector<1xf32>
    %317 = vector.multi_reduction <maximumf>, %316, %cst_66 [1] : vector<1x8xf32> to vector<1xf32>
    %318 = vector.shape_cast %317 : vector<1xf32> to vector<1x1xf32>
    %319 = vector.broadcast %318 : vector<1x1xf32> to vector<1x8xf32>
    %320 = arith.subf %316, %319 : vector<1x8xf32>
    %321 = math.exp %320 : vector<1x8xf32>
    %cst_67 = arith.constant dense<0.000000e+00> : vector<1xf32>
    %322 = vector.multi_reduction <add>, %321, %cst_67 [1] : vector<1x8xf32> to vector<1xf32>
    %323 = vector.shape_cast %322 : vector<1xf32> to vector<1x1xf32>
    %324 = tpu.reciprocal %323 {approx = true} : vector<1x1xf32> -> vector<1x1xf32>
    %325 = vector.broadcast %324 : vector<1x1xf32> to vector<1x8xf32>
    %326 = arith.mulf %321, %325 : vector<1x8xf32>
    %327 = arith.truncf %326 : vector<1x8xf32> to vector<1x8xbf16>
    %c0_68 = arith.constant 0 : index
    %c0_69 = arith.constant 0 : index
    %328 = vector.load %arg2[%c0_68, %c0_69] : memref<8x128xbf16, #tpu.memory_space<vmem>>, vector<8x128xbf16>
    %cst_70 = arith.constant dense<0.000000e+00> : vector<1x128xf32>
    %329 = tpu.matmul %327, %328, %cst_70 {dimension_numbers = #tpu.dot_dimension_numbers<[1], [0], [0], [1], [0, 0, 1, 1], [], []>} : vector<1x8xbf16>, vector<8x128xbf16>, vector<1x128xf32> -> vector<1x128xf32>
    %330 = vector.broadcast %309 : vector<1x1xf32> to vector<1x128xf32>
    %331 = arith.mulf %330, %329 : vector<1x128xf32>
    %cst_71 = arith.constant 1.000000e+00 : f32
    %332 = vector.broadcast %cst_71 : f32 to vector<1x1xf32>
    %333 = arith.subf %332, %309 : vector<1x1xf32>
    %334 = vector.broadcast %333 : vector<1x1xf32> to vector<1x128xf32>
    %335 = arith.mulf %334, %13 : vector<1x128xf32>
    %336 = arith.addf %331, %335 : vector<1x128xf32>
    %c1_i32_72 = arith.constant 1 : i32
    %337 = arith.cmpi sgt, %0, %c1_i32_72 : i32
    %338 = arith.extui %337 : i1 to i32
    %339 = arith.sitofp %338 : i32 to f32
    %340 = vector.broadcast %339 : f32 to vector<1x128xf32>
    %341 = arith.mulf %340, %336 : vector<1x128xf32>
    %cst_73 = arith.constant 1.000000e+00 : f32
    %342 = arith.subf %cst_73, %339 : f32
    %343 = vector.broadcast %342 : f32 to vector<1x128xf32>
    %344 = arith.mulf %343, %13 : vector<1x128xf32>
    %345 = arith.addf %341, %344 : vector<1x128xf32>
    %346 = vector.extract_strided_slice %303 {offsets = [0, 0], sizes = [1, 64], strides = [1, 1]} : vector<1x128xf32> to vector<1x64xf32>
    %cst_74 = arith.constant 0.000000e+00 : f32
    %347 = vector.broadcast %cst_74 : f32 to vector<1x128xf32>
    %348 = arith.maximumf %345, %347 : vector<1x128xf32>
    %349 = arith.truncf %348 : vector<1x128xf32> to vector<1x128xbf16>
    %c0_75 = arith.constant 0 : index
    %c0_76 = arith.constant 0 : index
    %350 = vector.load %arg13[%c0_75, %c0_76] : memref<128x64xbf16, #tpu.memory_space<vmem>>, vector<128x64xbf16>
    %cst_77 = arith.constant dense<0.000000e+00> : vector<1x64xf32>
    %351 = tpu.matmul %349, %350, %cst_77 {dimension_numbers = #tpu.dot_dimension_numbers<[1], [0], [0], [1], [0, 0, 1, 1], [], []>} : vector<1x128xbf16>, vector<128x64xbf16>, vector<1x64xf32> -> vector<1x64xf32>
    %352 = arith.addf %346, %351 : vector<1x64xf32>
    %cst_78 = arith.constant 0.000000e+00 : f32
    %353 = vector.broadcast %cst_78 : f32 to vector<1x64xf32>
    %354 = arith.maximumf %352, %353 : vector<1x64xf32>
    %355 = arith.truncf %354 : vector<1x64xf32> to vector<1x64xbf16>
    %c0_79 = arith.constant 0 : index
    %c0_80 = arith.constant 0 : index
    %356 = vector.load %arg14[%c0_79, %c0_80] : memref<64x128xbf16, #tpu.memory_space<vmem>>, vector<64x128xbf16>
    %cst_81 = arith.constant dense<0.000000e+00> : vector<1x128xf32>
    %357 = tpu.matmul %355, %356, %cst_81 {dimension_numbers = #tpu.dot_dimension_numbers<[1], [0], [0], [1], [0, 0, 1, 1], [], []>} : vector<1x64xbf16>, vector<64x128xbf16>, vector<1x128xf32> -> vector<1x128xf32>
    %c0_82 = arith.constant 0 : index
    %c0_83 = arith.constant 0 : index
    %358 = vector.load %arg15[%c0_82, %c0_83] : memref<1x128xf32, #tpu.memory_space<vmem>>, vector<1x128xf32>
    %359 = arith.addf %357, %358 : vector<1x128xf32>
    %c0_84 = arith.constant 0 : index
    %c0_85 = arith.constant 0 : index
    %360 = vector.load %arg16[%c0_84, %c0_85] : memref<1x128xf32, #tpu.memory_space<vmem>>, vector<1x128xf32>
    tpu.vector_store %arg16[%c0_84, %c0_85], %359 {strides = array<i32>} : memref<1x128xf32, #tpu.memory_space<vmem>>, vector<1x128xf32>,
    return
  }
}

</mosaic_0001>

<bundles_post_ra>
// kernel: tpu_custom_call.1
= control target key start
LH: loop header
LB: loop body
LE: loop exit
PB: predicated region body
PF: predicated region fallthrough
CT: control target
= control target key end

     0   :  { %s3819_s0 = inlined_call_operand.<no memory space> [shape: s32[1], index: 0, kind: input, shape index: {}]   ;;  %s3820_s1 = inlined_call_operand.vmem [shape: bf16[8,128], index: 1, kind: input, shape index: {}]   ;;  %s3821_s2 = inlined_call_operand.vmem [shape: bf16[8,128], index: 2, kind: input, shape index: {}]   ;;  %s3822_s3 = inlined_call_operand.vmem [shape: bf16[1,128], index: 3, kind: input, shape index: {}]   ;;  %s3823_s4 = inlined_call_operand.vmem [shape: bf16[128,128], index: 4, kind: input, shape index: {}]   ;;  %s3824_s5 = inlined_call_operand.hbm [shape: bf16[128,384], index: 5, kind: input, shape index: {}]   ;;  %s3825_s6 = inlined_call_operand.vmem [shape: f32[1,384], index: 6, kind: input, shape index: {}]   ;;  %s3826_s7 = inlined_call_operand.hbm [shape: bf16[128,384], index: 7, kind: input, shape index: {}]   ;;  %s3827_s8 = inlined_call_operand.vmem [shape: f32[1,384], index: 8, kind: input, shape index: {}]   ;;  %s3828_s9 = inlined_call_operand.vmem [shape: bf16[128,32], index: 9, kind: input, shape index: {}]   ;;  %s3829_s10 = inlined_call_operand.vmem [shape: f32[1,32], index: 10, kind: input, shape index: {}]   ;;  %s3830_s11 = inlined_call_operand.vmem [shape: bf16[32,128], index: 11, kind: input, shape index: {}]   ;;  %s3831_s12 = inlined_call_operand.vmem [shape: f32[1,128], index: 12, kind: input, shape index: {}]   ;;  %s3832_s13 = inlined_call_operand.vmem [shape: bf16[128,64], index: 13, kind: input, shape index: {}]   ;;  %s3833_s14 = inlined_call_operand.vmem [shape: bf16[64,128], index: 14, kind: input, shape index: {}]   ;;  %s3834_s15 = inlined_call_operand.vmem [shape: f32[1,128], index: 15, kind: input, shape index: {}]   ;;  %s3835_s16 = inlined_call_operand.hbm [shape: f32[1,128], index: 16, kind: output, shape index: {}]  }
   0x1   :  { %3837 = sst [smem:[#allocation12_spill]] %s3819_s0 }
   0x2   :  { %22 = vsyncpa [#allocation4], 0 }
   0x3   :  { %23 = vsyncpa [#allocation7], 0 }
   0x4   :  { %24 = vsyncpa [#allocation5], 0  ;;  %s3004_s21 = smov [#allocation3]  }
   0x5   :  { %s40_s22 = sshll.u32 %s3004_s21, 4  ;;  %s41_s22 = int_to_ptr.vmem [resolvable:$true] %s40_s22 }
   0x6   :  { %s2946_s23 = scalar_lea.vmem %s41_s22, 3072  ;;  %p2951_p1 = scmp.lt.s32.totalorder %s41_s22, %s41_s22 }
   0x7   :  { %p2947_p0 = scmp.ne.s32.totalorder %s41_s22, %s2946_s23  ;;  %p2952_p2 = scmp.lt.s32.totalorder %s2946_s23, %s2946_s23 }
   0x9   :  { %p2953_p3 = por %p2952_p2, %p2951_p1 }
   0xb   :  { %p2954_p4 = pnand %p2953_p3, %p2947_p0 }
   0xd   :  { %2957 = shalt.err (!%p2954_p4)
}
   0xe   :  { %s3005_s24 = smov 192   ;;  %s3006_s25 = smov 12  }
   0xf   :  { %46 = dma.hbm_to_vmem [thread:$0]  %s3824_s5, 3072, %s41_s22, [#allocation4], %s3005_s24, %s3005_s24, %s3006_s25  }
  0x10   :  { %s3007_s28 = smov [#allocation6]  }
  0x11   :  { %s54_s29 = sshll.u32 %s3007_s28, 4  ;;  %s55_s29 = int_to_ptr.vmem [resolvable:$true] %s54_s29 }
  0x12   :  { %s2966_s30 = scalar_lea.vmem %s55_s29, 3072  ;;  %p2971_p6 = scmp.lt.s32.totalorder %s55_s29, %s55_s29 }
  0x13   :  { %p2967_p5 = scmp.ne.s32.totalorder %s55_s29, %s2966_s30  ;;  %p2972_p7 = scmp.lt.s32.totalorder %s2966_s30, %s2966_s30 }
  0x15   :  { %p2973_p8 = por %p2972_p7, %p2971_p6 }
  0x17   :  { %p2974_p9 = pnand %p2973_p8, %p2967_p5 }
  0x19   :  { %2977 = shalt.err (!%p2974_p9)
}
  0x1a   :  { %60 = dma.hbm_to_vmem [thread:$0]  %s3826_s7, 3072, %s55_s29, [#allocation7], %s3005_s24, %s3005_s24, %s3006_s25  }
  0x1b   :  { %2998 = dma.done.wait [#allocation4], 3072  }
  0x1c   :  { %2999 = vsyncadd [#allocation4], 4294964224 }
  0x1d   :  { %3000 = dma.done.wait [#allocation7], 3072  }
  0x1e   :  { %3001 = vsyncadd [#allocation7], 4294964224  ;;  %v3008_v0 = vmov 0.0   ;;  %vm3009_vm0 = vmmov 0   ;;  %v3010_v1 = vmov 0   ;;  %v2728_v2 = vld [vmem:[%s3823_s4 + $0x38] sm:$0xff]  }
  0x1f   :  { %2446 = vmatprep.subr.bf16.mxu0 %v3008_v0  ;;  %2462 = vmatprep.mubr.msk.bf16.mxu0 %vm3009_vm0, %v3008_v0  ;;  %v2729_v3 = vld [vmem:[#allocation3 + $0xac] ss:$12 sps:$4 sm:$0xff]   ;;  %v2731_v4 = vld [vmem:[#allocation3 + $0xa8] ss:$12 sps:$4 sm:$0xff]   ;;  %v2735_v7 = vld [vmem:[#allocation3 + $0x90] ss:$12 sps:$4 sm:$0xff]  }
  0x20   :  { %410 = vmatprep.mubr.bf16.mxu1 %v3010_v1  ;;  %2447 = vmatpush3.bf16.msra.mxu0 %v2728_v2  ;;  %v2732_v5 = vld [vmem:[%s3823_s4 + $0x30] sm:$0xff]   ;;  %v2736_v8 = vld [vmem:[%s3823_s4 + $0x28] sm:$0xff]   ;;  %v2739_v10 = vld [vmem:[#allocation3 + $0x78] ss:$12 sps:$4 sm:$0xff]   ;;  %vm1659_vm2 = vcmask 1040384   ;;  %vm1661_vm3 = vcmask 1041408  }
  0x21   :  { %378 = vmatprep.subr.bf16.mxu1 %v2729_v3  ;;  %2448 = vmatprep.subr.bf16.mxu0 %v3008_v0  ;;  %v2733_v6 = vld [vmem:[#allocation3 + $0x94] ss:$12 sps:$4 sm:$0xff]   ;;  %v2737_v9 = vld [vmem:[#allocation3 + $0x7c] ss:$12 sps:$4 sm:$0xff]   ;;  %v2741_v11 = vld [vmem:[#allocation3 + $0x64] ss:$12 sps:$4 sm:$0xff]  }
  0x22   :  { %379 = vmatpush1.bf16.msra.mxu1 %v2731_v4  ;;  %v2740_v12 = vld [vmem:[%s3823_s4 + $0x20] sm:$0xff]   ;;  %v2745_v14 = vld [vmem:[#allocation3 + $0x4c] ss:$12 sps:$4 sm:$0xff]   ;;  %v2747_v16 = vld [vmem:[#allocation3 + $0x48] ss:$12 sps:$4 sm:$0xff]   ;;  %vm1663_vm4 = vcmask 1042432  }
  0x23   :  { %380 = vmatprep.subr.bf16.mxu1 %v2733_v6  ;;  %v2743_v13 = vld [vmem:[#allocation3 + $0x60] ss:$12 sps:$4 sm:$0xff]   ;;  %v2744_v15 = vld [vmem:[%s3823_s4 + $0x18] sm:$0xff]   ;;  %v2748_v18 = vld [vmem:[%s3823_s4 + $0x10] sm:$0xff]   ;;  %vm1665_vm5 = vcmask 1043456   ;;  %vm1667_vm6 = vcmask 1044480  }
  0x24   :  { %2449 = vmatpush3.bf16.msra.mxu0 %v2732_v5  ;;  %v2749_v17 = vld [vmem:[#allocation3 + $0x34] ss:$12 sps:$4 sm:$0xff]   ;;  %v2751_v19 = vld [vmem:[#allocation3 + $0x30] ss:$12 sps:$4 sm:$0xff]   ;;  %v2752_v21 = vld [vmem:[%s3823_s4 + $0x8] sm:$0xff]   ;;  %vm1669_vm7 = vcmask 1045504  }
  0x25   :  { %2450 = vmatprep.subr.bf16.mxu0 %v3008_v0  ;;  %v2753_v20 = vld [vmem:[#allocation3 + $0x1c] ss:$12 sps:$4 sm:$0xff]   ;;  %v2755_v22 = vld [vmem:[#allocation3 + $0x18] ss:$12 sps:$4 sm:$0xff]   ;;  %v2759_v25 = vld [vmem:[#allocation3] ss:$12 sps:$4 sm:$0xff]  }
  0x26   :  { %381 = vmatpush1.bf16.msra.mxu1 %v2735_v7  ;;  %v2757_v23 = vld [vmem:[#allocation3 + $0x4] ss:$12 sps:$4 sm:$0xff]   ;;  %v3139_v26 = vld [vmem:[#allocation6 + $0xac] ss:$12 sps:$4 sm:$0xff]   ;;  %v85_v27 = vld [vmem:[%s3822_s3] sm:$0x1] }
  0x27   :  { %382 = vmatprep.subr.bf16.mxu1 %v2737_v9  ;;  %v2756_v24 = vld [vmem:[%s3823_s4] sm:$0xff]   ;;  %v2760_v28 = vld [vmem:[#allocation3 + $0xb0] ss:$12 sps:$4 sm:$0xff]   ;;  %v3148_v30 = vld [vmem:[#allocation6 + $0xa8] ss:$12 sps:$4 sm:$0xff]   ;;  %s3838_s4 = sld [smem:[#allocation12_spill]]  ;;  %v235_v9 = vlaneseq }
  0x28   :  { %2451 = vmatpush3.bf16.msra.mxu0 %v2736_v8  ;;  %v200_v29 = vld [vmem:[%s3820_s1] sm:$0xf]  ;;  %v2764_v32 = vld [vmem:[#allocation3 + $0x98] ss:$12 sps:$4 sm:$0xff]   ;;  %v3157_v33 = vld [vmem:[#allocation6 + $0x90] ss:$12 sps:$4 sm:$0xff]  }
  0x29   :  { %2452 = vmatprep.subr.bf16.mxu0 %v3008_v0  ;;  %v3151_v31 = vld [vmem:[#allocation6 + $0x94] ss:$12 sps:$4 sm:$0xff]   ;;  %v3161_v34 = vld [vmem:[#allocation6 + $0x7c] ss:$12 sps:$4 sm:$0xff]   ;;  %v3165_v36 = vld [vmem:[#allocation6 + $0x78] ss:$12 sps:$4 sm:$0xff]  }
  0x2a   :  { %383 = vmatpush1.bf16.msra.mxu1 %v2739_v10  ;;  %v2768_v35 = vld [vmem:[#allocation3 + $0x80] ss:$12 sps:$4 sm:$0xff]   ;;  %v3168_v37 = vld [vmem:[#allocation6 + $0x64] ss:$12 sps:$4 sm:$0xff]   ;;  %v2772_v38 = vld [vmem:[#allocation3 + $0x68] ss:$12 sps:$4 sm:$0xff]  }
  0x2b   :  { %384 = vmatprep.subr.bf16.mxu1 %v2741_v11  ;;  %v3171_v39 = vld [vmem:[#allocation6 + $0x60] ss:$12 sps:$4 sm:$0xff]   ;;  %v2776_v40 = vld [vmem:[#allocation3 + $0x50] ss:$12 sps:$4 sm:$0xff]   ;;  %v3177_v42 = vld [vmem:[#allocation6 + $0x48] ss:$12 sps:$4 sm:$0xff]  }
  0x2c   :  { %2453 = vmatpush3.bf16.msra.mxu0 %v2740_v12  ;;  %v3175_v41 = vld [vmem:[#allocation6 + $0x4c] ss:$12 sps:$4 sm:$0xff]   ;;  %v3180_v43 = vld [vmem:[#allocation6 + $0x34] ss:$12 sps:$4 sm:$0xff]   ;;  %v3184_v45 = vld [vmem:[#allocation6 + $0x30] ss:$12 sps:$4 sm:$0xff]  }
  0x2d   :  { %2454 = vmatprep.subr.bf16.mxu0 %v3008_v0  ;;  %v2780_v44 = vld [vmem:[#allocation3 + $0x38] ss:$12 sps:$4 sm:$0xff]   ;;  %v3187_v46 = vld [vmem:[#allocation6 + $0x1c] ss:$12 sps:$4 sm:$0xff]   ;;  %v2784_v47 = vld [vmem:[#allocation3 + $0x20] ss:$12 sps:$4 sm:$0xff]  }
  0x2e   :  { %385 = vmatpush1.bf16.msra.mxu1 %v2743_v13  ;;  %v3191_v48 = vld [vmem:[#allocation6 + $0x18] ss:$12 sps:$4 sm:$0xff]   ;;  %v2788_v50 = vld [vmem:[#allocation3 + $0x8] ss:$12 sps:$4 sm:$0xff]   ;;  %v3200_v51 = vld [vmem:[#allocation6] ss:$12 sps:$4 sm:$0xff]  }
  0x2f   :  { %386 = vmatprep.subr.bf16.mxu1 %v2745_v14  ;;  %v3194_v49 = vld [vmem:[#allocation6 + $0x4] ss:$12 sps:$4 sm:$0xff]   ;;  %v3219_v54 = vld [vmem:[#allocation6 + $0x80] ss:$12 sps:$4 sm:$0xff]   ;;  %v3225_v55 = vld [vmem:[#allocation6 + $0x68] ss:$12 sps:$4 sm:$0xff]  }
  0x30   :  { %2455 = vmatpush3.bf16.msra.mxu0 %v2744_v15  ;;  %v3203_v52 = vld [vmem:[#allocation6 + $0xb0] ss:$12 sps:$4 sm:$0xff]   ;;  %v3209_v53 = vld [vmem:[#allocation6 + $0x98] ss:$12 sps:$4 sm:$0xff]   ;;  %v3243_v58 = vld [vmem:[#allocation6 + $0x20] ss:$12 sps:$4 sm:$0xff]  }
  0x31   :  { %2456 = vmatprep.subr.bf16.mxu0 %v3008_v0  ;;  %v3231_v56 = vld [vmem:[#allocation6 + $0x50] ss:$12 sps:$4 sm:$0xff]   ;;  %v3237_v57 = vld [vmem:[#allocation6 + $0x38] ss:$12 sps:$4 sm:$0xff]   ;;  %v3249_v59 = vld [vmem:[#allocation6 + $0x8] ss:$12 sps:$4 sm:$0xff]  }
  0x32   :  { %387 = vmatpush1.bf16.msra.mxu1 %v2747_v16  ;;  %p862_p10 = scmp.gt.s32.totalorder %s3838_s4, 1  ;;  %v236_v10 = vshrl.u32 %v235_v9, 7  ;;  %v233_v12 = vld [vmem:[%s3825_s6] sm:$0x7]  ;;  %p738_p11 = scmp.gt.s32.totalorder %s3838_s4, 0  ;;  %vm1671_vm8 = vcmask 1046528  }
  0x33   :  { %388 = vmatprep.subr.bf16.mxu1 %v2749_v17  ;;  %v491_v13 = vld [vmem:[%s3827_s8] sm:$0x7]  ;;  %p993_p12 = scmp.gt.s32.totalorder %s3838_s4, 2  ;;  %p1123_p13 = scmp.gt.s32.totalorder %s3838_s4, 3  ;;  %vm1809_vm9 = vcmask 261120   ;;  %vm1941_vm11 = vcmask 57344  }
  0x34   :  { %2457 = vmatpush3.bf16.msra.mxu0 %v2748_v18  ;;  %s3280_s19 = scalar_select %p862_p10, 1, 0  ;;  %v237_v11 = vsub.s32 0, %v236_v10  ;;  %v241_v18 = vsub.s32 1, %v236_v10  ;;  %vm1955_vm12 = vcmask 64512   ;;  %vm2161_vm13 = vcmask 523264  }
  0x35   :  { %2458 = vmatprep.subr.bf16.mxu0 %v3008_v0  ;;  %s739_s26 = scalar_select %p738_p11, 1, 0 }
  0x36   :  { %389 = vmatpush1.bf16.msra.mxu1 %v2751_v19  ;;  %s864_s20 = scvt.s32.f32 %s3280_s19  ;;  %v238_v14 = vrot.slane %v233_v12, %v237_v11  ;;  %v3294_v15 = vrot.slane %v491_v13, %v237_v11  ;;  %p1255_p0 = scmp.gt.s32.totalorder %s3838_s4, 4 }
  0x37   :  { %390 = vmatprep.subr.bf16.mxu1 %v2753_v20  ;;  %s740_s27 = scvt.s32.f32 %s739_s26  ;;  %p1385_p1 = scmp.gt.s32.totalorder %s3838_s4, 5 }
  0x38   :  { %2459 = vmatpush3.bf16.msra.mxu0 %v2752_v21  ;;  %s3292_s25 = ssub.f32 1.0, %s864_s20  ;;  %p1517_p2 = scmp.gt.s32.totalorder %s3838_s4, 6 }
  0x39   :  { %2460 = vmatprep.subr.bf16.mxu0 %v3008_v0  ;;  %s743_s28 = ssub.f32 1.0, %s740_s27  ;;  %p1647_p3 = scmp.gt.s32.totalorder %s3838_s4, 7 }
  0x3a   :  { %391 = vmatpush1.bf16.msra.mxu1 %v2755_v22  ;;  %v868_v21 = vstv %s3292_s25  ;;  %s994_s0 = scalar_select %p993_p12, 1, 0 }
  0x3b   :  { %392 = vmatprep.subr.bf16.mxu1 %v2757_v23  ;;  %s1124_s1 = scalar_select %p1123_p13, 1, 0 }
  0x3c   :  { %2461 = vmatpush3.bf16.msra.mxu0 %v2756_v24  ;;  %v3300_v24 = vrot.slane %v491_v13, %v241_v18  ;;  %s995_s17 = scvt.s32.f32 %s994_s0  ;;  %s2311_s21 = sadd.s32 4294967295, %s3838_s4 }
  0x3d   :  { %2466 = vmatprep.subr.bf16.mxu0 %v3008_v0  ;;  %s1125_s3 = scvt.s32.f32 %s1124_s1 }
  0x3e   :  { %393 = vmatpush1.bf16.msra.mxu1 %v2759_v25  ;;  %s998_s5 = ssub.f32 1.0, %s995_s17 }
  0x3f   :  { %2463 = vmatmul.mubr.bf16.vlgmr.msra.gmra.mxu0 %v85_v27  ;;  %636 = vmatprep.subr.bf16.mxu1 %v3139_v26  ;;  %s1128_s19 = ssub.f32 1.0, %s1125_s3 }
  0x40   :  { %2467 = vmatpush3.bf16.msra.mxu0 %v2760_v28  ;;  %2482 = vmatprep.mubr.msk.bf16.mxu0 %vm3009_vm0, %v3008_v0  ;;  %s1256_s22 = scalar_select %p1255_p0, 1, 0 }
  0x41   :  { %411 = vmatmul.mubr.bf16.vlgmr.msra.gmra.mxu1 %v200_v29  ;;  %2468 = vmatprep.subr.bf16.mxu0 %v3008_v0  ;;  %s1386_s8 = scalar_select %p1385_p1, 1, 0 }
  0x42   :  { %637 = vmatpush1.bf16.msra.mxu1 %v3148_v30  ;;  %668 = vmatprep.mubr.bf16.mxu1 %v3010_v1  ;;  %s1257_s23 = scvt.s32.f32 %s1256_s22 }
  0x43   :  { %638 = vmatprep.subr.bf16.mxu1 %v3151_v31  ;;  %s1387_s26 = scvt.s32.f32 %s1386_s8 }
  0x44   :  { %2469 = vmatpush3.bf16.msra.mxu0 %v2764_v32  ;;  %v242_v32 = vrot.slane %v233_v12, %v241_v18  ;;  %s1260_s24 = ssub.f32 1.0, %s1257_s23 }
  0x45   :  { %2470 = vmatprep.subr.bf16.mxu0 %v3008_v0  ;;  %s1518_s30 = scalar_select %p1517_p2, 1, 0 }
  0x46   :  { %639 = vmatpush1.bf16.msra.mxu1 %v3157_v33  ;;  %s1648_s29 = scalar_select %p1647_p3, 1, 0 }
  0x47   :  { %640 = vmatprep.subr.bf16.mxu1 %v3161_v34  ;;  %s1519_s0 = scvt.s32.f32 %s1518_s30 }
  0x48   :  { %2471 = vmatpush3.bf16.msra.mxu0 %v2768_v35  ;;  %s1649_s30 = scvt.s32.f32 %s1648_s29 }
  0x49   :  { %2472 = vmatprep.subr.bf16.mxu0 %v3008_v0 }
  0x4a   :  { %641 = vmatpush1.bf16.msra.mxu1 %v3165_v36 }
  0x4b   :  { %642 = vmatprep.subr.bf16.mxu1 %v3168_v37 }
  0x4c   :  { %2473 = vmatpush3.bf16.msra.mxu0 %v2772_v38 }
  0x4d   :  { %2474 = vmatprep.subr.bf16.mxu0 %v3008_v0 }
  0x4e   :  { %643 = vmatpush1.bf16.msra.mxu1 %v3171_v39 }
  0x4f   :  { %644 = vmatprep.subr.bf16.mxu1 %v3175_v41 }
  0x50   :  { %2475 = vmatpush3.bf16.msra.mxu0 %v2776_v40 }
  0x51   :  { %2476 = vmatprep.subr.bf16.mxu0 %v3008_v0 }
  0x52   :  { %645 = vmatpush1.bf16.msra.mxu1 %v3177_v42 }
  0x53   :  { %646 = vmatprep.subr.bf16.mxu1 %v3180_v43 }
  0x54   :  { %2477 = vmatpush3.bf16.msra.mxu0 %v2780_v44 }
  0x55   :  { %2478 = vmatprep.subr.bf16.mxu0 %v3008_v0 }
  0x56   :  { %647 = vmatpush1.bf16.msra.mxu1 %v3184_v45 }
  0x57   :  { %648 = vmatprep.subr.bf16.mxu1 %v3187_v46 }
  0x58   :  { %2479 = vmatpush3.bf16.msra.mxu0 %v2784_v47 }
  0x59   :  { %2480 = vmatprep.subr.bf16.mxu0 %v3008_v0 }
  0x5a   :  { %649 = vmatpush1.bf16.msra.mxu1 %v3191_v48 }
  0x5b   :  { %650 = vmatprep.subr.bf16.mxu1 %v3194_v49 }
  0x5c   :  { %2481 = vmatpush3.bf16.msra.mxu0 %v2788_v50 }
  0x5d   :  { %2486 = vmatprep.subr.bf16.mxu0 %v3008_v0 }
  0x5e   :  { %651 = vmatpush1.bf16.msra.mxu1 %v3200_v51 }
  0x5f   :  { %2483 = vmatmul.mubr.bf16.vlgmr.msra.gmra.mxu0 %v200_v29  ;;  %748 = vmatprep.subr.bf16.mxu1 %v3139_v26 }
  0x60   :  { %2487 = vmatpush3.bf16.msra.mxu0 %v3203_v52  ;;  %2502 = vmatprep.mubr.msk.bf16.mxu0 %vm3009_vm0, %v3008_v0 }
  0x61   :  { %669 = vmatmul.mubr.bf16.vlgmr.msra.gmra.mxu1 %v3010_v1  ;;  %2488 = vmatprep.subr.bf16.mxu0 %v3008_v0 }
  0x62   :  { %749 = vmatpush1.bf16.msra.mxu1 %v3148_v30  ;;  %780 = vmatprep.mubr.bf16.mxu1 %v3010_v1 }
  0x63   :  { %750 = vmatprep.subr.bf16.mxu1 %v3151_v31 }
  0x64   :  { %2489 = vmatpush3.bf16.msra.mxu0 %v3209_v53 }
  0x65   :  { %2490 = vmatprep.subr.bf16.mxu0 %v3008_v0 }
  0x66   :  { %751 = vmatpush1.bf16.msra.mxu1 %v3157_v33 }
  0x67   :  { %752 = vmatprep.subr.bf16.mxu1 %v3161_v34 }
  0x68   :  { %2491 = vmatpush3.bf16.msra.mxu0 %v3219_v54 }
  0x69   :  { %2492 = vmatprep.subr.bf16.mxu0 %v3008_v0 }
  0x6a   :  { %753 = vmatpush1.bf16.msra.mxu1 %v3165_v36 }
  0x6b   :  { %754 = vmatprep.subr.bf16.mxu1 %v3168_v37 }
  0x6c   :  { %2493 = vmatpush3.bf16.msra.mxu0 %v3225_v55 }
  0x6d   :  { %2494 = vmatprep.subr.bf16.mxu0 %v3008_v0 }
  0x6e   :  { %755 = vmatpush1.bf16.msra.mxu1 %v3171_v39 }
  0x6f   :  { %756 = vmatprep.subr.bf16.mxu1 %v3175_v41 }
  0x70   :  { %2495 = vmatpush3.bf16.msra.mxu0 %v3231_v56 }
  0x71   :  { %2496 = vmatprep.subr.bf16.mxu0 %v3008_v0 }
  0x72   :  { %757 = vmatpush1.bf16.msra.mxu1 %v3177_v42 }
  0x73   :  { %758 = vmatprep.subr.bf16.mxu1 %v3180_v43 }
  0x74   :  { %2497 = vmatpush3.bf16.msra.mxu0 %v3237_v57 }
  0x75   :  { %2498 = vmatprep.subr.bf16.mxu0 %v3008_v0 }
  0x76   :  { %759 = vmatpush1.bf16.msra.mxu1 %v3184_v45 }
  0x77   :  { %760 = vmatprep.subr.bf16.mxu1 %v3187_v46 }
  0x78   :  { %2499 = vmatpush3.bf16.msra.mxu0 %v3243_v58 }
  0x79   :  { %2500 = vmatprep.subr.bf16.mxu0 %v3008_v0 }
  0x7a   :  { %761 = vmatpush1.bf16.msra.mxu1 %v3191_v48 }
  0x7b   :  { %762 = vmatprep.subr.bf16.mxu1 %v3194_v49 }
  0x7c   :  { %2501 = vmatpush3.bf16.msra.mxu0 %v3249_v59 }
  0x7d   :  { %2506 = vmatprep.subr.bf16.mxu0 %v3008_v0 }
  0x7e   :  { %763 = vmatpush1.bf16.msra.mxu1 %v3200_v51 }
  0x7f   :  { %2503 = vmatmul.mubr.bf16.vlgmr.msra.gmra.mxu0 %v3010_v1  ;;  %879 = vmatprep.subr.bf16.mxu1 %v3139_v26 }
  0x80   :  { %2507 = vmatpush3.bf16.msra.mxu0 %v3203_v52  ;;  %2522 = vmatprep.mubr.msk.bf16.mxu0 %vm3009_vm0, %v3008_v0 }
  0x81   :  { %2508 = vmatprep.subr.bf16.mxu0 %v3008_v0 }
  0x84   :  { %2509 = vmatpush3.bf16.msra.mxu0 %v3209_v53 }
  0x85   :  { %2510 = vmatprep.subr.bf16.mxu0 %v3008_v0 }
  0x88   :  { %2511 = vmatpush3.bf16.msra.mxu0 %v3219_v54 }
  0x89   :  { %2512 = vmatprep.subr.bf16.mxu0 %v3008_v0 }
  0x8c   :  { %2513 = vmatpush3.bf16.msra.mxu0 %v3225_v55 }
  0x8d   :  { %2514 = vmatprep.subr.bf16.mxu0 %v3008_v0 }
  0x90   :  { %2515 = vmatpush3.bf16.msra.mxu0 %v3231_v56 }
  0x91   :  { %2516 = vmatprep.subr.bf16.mxu0 %v3008_v0 }
  0x94   :  { %2517 = vmatpush3.bf16.msra.mxu0 %v3237_v57 }
  0x95   :  { %2518 = vmatprep.subr.bf16.mxu0 %v3008_v0 }
  0x98   :  { %2519 = vmatpush3.bf16.msra.mxu0 %v3243_v58 }
  0x99   :  { %2520 = vmatprep.subr.bf16.mxu0 %v3008_v0 }
  0x9c   :  { %2521 = vmatpush3.bf16.msra.mxu0 %v3249_v59 }
  0x9d   :  { %2526 = vmatprep.subr.bf16.mxu0 %v3008_v0 }
  0xff   :  { %v184_v60 = vpop.f32.mrf.mxu0 }
 0x100   :  { %v2230_v61 = vmul.f32 -1.442695, %v184_v60 }
 0x101   :  { %v412_v62 = vpop.f32.mrf.mxu1  ;;  %v2464_v63 = vpop.f32.mrf.mxu0 }
 0x102   :  { %2822 = vpow2.f32 %v2230_v61  ;;  %v3298_v23 = vadd.f32 %v412_v62, %v238_v14 }
 0x103   :  { %v414_v2 = vpop.f32.mrf.mxu1  ;;  %v187_v3 = vpop.f32.mrf.mxu0 }
 0x104   :  { %v3312_v61 = vadd.f32 %v414_v2, %v242_v32 }
 0x105   :  { %v416_v4 = vpop.f32.mrf.mxu1  ;;  %v2465_v5 = vpop.f32.mrf.mxu0 }
 0x106   :  { %v245_v5 = vsub.s32 2, %v236_v10 }
 0x107   :  { %v417_v6 = vpop.f32.mrf.mxu1 }
 0x108   :  { %v3315_v6 = vrot.slane %v491_v13, %v245_v5  ;;  %v246_v14 = vrot.slane %v233_v12, %v245_v5 }
 0x10f   :  { %v2823_v7 = vpop.eup %2822 }
 0x110   :  { %v193_v8 = vadd.f32 1.0, %v2823_v7 }
 0x112   :  { %2824 = vrcp.f32 %v193_v8 }
 0x11f   :  { %v2825_v16 = vpop.eup %2824  ;;  %v453_v17 = vpop.f32.mrf.mxu0 }
 0x120   :  { %vm196_vm1 = vcmp.gt.f32.partialorder %v2825_v16, 0.5 }
 0x121   :  { %v670_v19 = vpop.f32.mrf.mxu1  ;;  %v2484_v20 = vpop.f32.mrf.mxu0  ;;  %v2231_v22 = vsel %vm196_vm1, 1.0, %v3008_v0 }
 0x122   :  { %v671_v25 = vadd.f32 %v670_v19, %v3294_v15  ;;  %v3303_v27 = vmul.f32 %v2825_v16, %v2231_v22  ;;  %v3318_v22 = vadd.f32 %v453_v17, %v246_v14  ;;  %v741_v17 = vstv %s740_s27  ;;  %s1390_s27 = ssub.f32 1.0, %s1387_s26 }
 0x123   :  { %v672_v28 = vpop.f32.mrf.mxu1  ;;  %v456_v29 = vpop.f32.mrf.mxu0 }
 0x124   :  { %v717_v35 = vadd.f32 %v671_v25, %v3298_v23  ;;  %v3309_v38 = vmul.f32 %v868_v21, %v3303_v27  ;;  %v673_v50 = vadd.f32 %v672_v28, %v3300_v24  ;;  %v744_v29 = vstv %s743_s28 }
 0x125   :  { %v674_v40 = vpop.f32.mrf.mxu1  ;;  %v2485_v44 = vpop.f32.mrf.mxu0 }
 0x126   :  { %v2280_v47 = vmul.f32 -1.442695, %v717_v35  ;;  %v718_v62 = vadd.f32 %v673_v50, %v3312_v61  ;;  %v745_v44 = vmul.f32 0.0, %v744_v29 }
 0x127   :  { %v675_v60 = vpop.f32.mrf.mxu1 }
 0x128   :  { %2826 = vpow2.f32 %v2280_v47  ;;  %v2281_v63 = vmul.f32 -1.442695, %v718_v62 }
 0x12a   :  { %2828 = vpow2.f32 %v2281_v63 }
 0x135   :  { %v2827_v3 = vpop.eup %2826 }
 0x136   :  { %v725_v4 = vadd.f32 1.0, %v2827_v3 }
 0x137   :  { %v2829_v7 = vpop.eup %2828 }
 0x138   :  { %2830 = vrcp.f32 %v725_v4  ;;  %v726_v16 = vadd.f32 1.0, %v2829_v7 }
 0x13a   :  { %2832 = vrcp.f32 %v726_v16 }
 0x13f   :  { %v711_v8 = vpop.f32.mrf.mxu0 }
 0x140   :  { %v712_v18 = vadd.f32 %v711_v8, %v3315_v6 }
 0x141   :  { %v2504_v11 = vpop.f32.mrf.mxu0 }
 0x143   :  { %v714_v2 = vpop.f32.mrf.mxu0 }
 0x145   :  { %v2831_v19 = vpop.eup %2830  ;;  %v2505_v20 = vpop.f32.mrf.mxu0 }
 0x146   :  { %v731_v25 = vmul.f32 %v2831_v19, %v712_v18 }
 0x147   :  { %v2833_v12 = vpop.eup %2832 }
 0x148   :  { %v732_v10 = vadd.f32 %v731_v25, %v3318_v22  ;;  %v734_v13 = vsub.f32 1.0, %v2833_v12  ;;  %v736_v35 = vmul.f32 0.0, %v2833_v12 }
 0x14a   :  { %2834 = vtanh.f32 %v732_v10 }
 0x157   :  { %v2835_v28 = vpop.eup %2834 }
 0x158   :  { %v735_v32 = vmul.f32 %v2835_v28, %v734_v13 }
 0x15a   :  { %v737_v40 = vadd.f32 %v736_v35, %v735_v32 }
 0x15c   :  { %v742_v47 = vmul.f32 %v741_v17, %v737_v40 }
 0x15e   :  { %v3324_v50 = vadd.f32 %v745_v44, %v742_v47 }
 0x160   :  { %v747_v60 = vpack.c.bf16 %v3324_v50, %v3324_v50 }
 0x162   :  { %781 = vmatmul.mubr.bf16.vlgmr.msra.gmra.mxu1 %v747_v60  ;;  %2523 = vmatmul.mubr.bf16.vlgmr.msra.gmra.mxu0 %v747_v60  ;;  %v858_v60 = vrot.slane %v3324_v50, 7 }
 0x163   :  { %880 = vmatpush1.bf16.msra.mxu1 %v3148_v30  ;;  %2527 = vmatpush3.bf16.msra.mxu0 %v3203_v52 }
 0x164   :  { %881 = vmatprep.subr.bf16.mxu1 %v3151_v31  ;;  %2528 = vmatprep.subr.bf16.mxu0 %v3008_v0 }
 0x165   :  { %911 = vmatprep.mubr.bf16.mxu1 %v3010_v1  ;;  %2542 = vmatprep.mubr.msk.bf16.mxu0 %vm3009_vm0, %v3008_v0 }
 0x167   :  { %882 = vmatpush1.bf16.msra.mxu1 %v3157_v33  ;;  %2529 = vmatpush3.bf16.msra.mxu0 %v3209_v53 }
 0x168   :  { %883 = vmatprep.subr.bf16.mxu1 %v3161_v34  ;;  %2530 = vmatprep.subr.bf16.mxu0 %v3008_v0 }
 0x16b   :  { %884 = vmatpush1.bf16.msra.mxu1 %v3165_v36  ;;  %2531 = vmatpush3.bf16.msra.mxu0 %v3219_v54 }
 0x16c   :  { %885 = vmatprep.subr.bf16.mxu1 %v3168_v37  ;;  %2532 = vmatprep.subr.bf16.mxu0 %v3008_v0 }
 0x16f   :  { %886 = vmatpush1.bf16.msra.mxu1 %v3171_v39  ;;  %2533 = vmatpush3.bf16.msra.mxu0 %v3225_v55 }
 0x170   :  { %887 = vmatprep.subr.bf16.mxu1 %v3175_v41  ;;  %2534 = vmatprep.subr.bf16.mxu0 %v3008_v0 }
 0x173   :  { %888 = vmatpush1.bf16.msra.mxu1 %v3177_v42  ;;  %2535 = vmatpush3.bf16.msra.mxu0 %v3231_v56 }
 0x174   :  { %889 = vmatprep.subr.bf16.mxu1 %v3180_v43  ;;  %2536 = vmatprep.subr.bf16.mxu0 %v3008_v0 }
 0x177   :  { %890 = vmatpush1.bf16.msra.mxu1 %v3184_v45  ;;  %2537 = vmatpush3.bf16.msra.mxu0 %v3237_v57 }
 0x178   :  { %891 = vmatprep.subr.bf16.mxu1 %v3187_v46  ;;  %2538 = vmatprep.subr.bf16.mxu0 %v3008_v0 }
 0x17b   :  { %892 = vmatpush1.bf16.msra.mxu1 %v3191_v48  ;;  %2539 = vmatpush3.bf16.msra.mxu0 %v3243_v58 }
 0x17c   :  { %893 = vmatprep.subr.bf16.mxu1 %v3194_v49  ;;  %2540 = vmatprep.subr.bf16.mxu0 %v3008_v0 }
 0x17f   :  { %894 = vmatpush1.bf16.msra.mxu1 %v3200_v51  ;;  %2541 = vmatpush3.bf16.msra.mxu0 %v3249_v59 }
 0x180   :  { %1009 = vmatprep.subr.bf16.mxu1 %v3139_v26  ;;  %2546 = vmatprep.subr.bf16.mxu0 %v3008_v0 }
 0x222   :  { %v782_v62 = vpop.f32.mrf.mxu1  ;;  %v823_v63 = vpop.f32.mrf.mxu0 }
 0x223   :  { %v783_v3 = vadd.f32 %v782_v62, %v3294_v15  ;;  %v824_v29 = vadd.f32 %v823_v63, %v3315_v6  ;;  %v3375_v63 = vstv %s864_s20 }
 0x224   :  { %v784_v4 = vpop.f32.mrf.mxu1  ;;  %v2524_v5 = vpop.f32.mrf.mxu0 }
 0x225   :  { %v831_v7 = vrot.slane %v783_v3, 7  ;;  %v785_v8 = vadd.f32 %v784_v4, %v3300_v24  ;;  %v850_v35 = vrot.slane %v824_v29, 7 }
 0x226   :  { %v786_v11 = vpop.f32.mrf.mxu1  ;;  %v826_v14 = vpop.f32.mrf.mxu0 }
 0x227   :  { %v835_v16 = vadd.f32 %v831_v7, %v3298_v23  ;;  %v832_v20 = vrot.slane %v785_v8, 7  ;;  %v869_v7 = vmul.f32 %v868_v21, %v3324_v50 }
 0x228   :  { %v787_v18 = vpop.f32.mrf.mxu1  ;;  %v2525_v2 = vpop.f32.mrf.mxu0 }
 0x229   :  { %v2282_v19 = vmul.f32 -1.442695, %v835_v16  ;;  %v836_v25 = vadd.f32 %v832_v20, %v3312_v61  ;;  %v871_v14 = vrot.slane %v869_v7, 7 }
 0x22b   :  { %2836 = vpow2.f32 %v2282_v19  ;;  %v2283_v10 = vmul.f32 -1.442695, %v836_v25 }
 0x22d   :  { %2838 = vpow2.f32 %v2283_v10 }
 0x238   :  { %v2837_v12 = vpop.eup %2836 }
 0x239   :  { %v843_v13 = vadd.f32 1.0, %v2837_v12 }
 0x23a   :  { %v2839_v28 = vpop.eup %2838 }
 0x23b   :  { %2840 = vrcp.f32 %v843_v13  ;;  %v844_v32 = vadd.f32 1.0, %v2839_v28 }
 0x23d   :  { %2842 = vrcp.f32 %v844_v32 }
 0x248   :  { %v2841_v17 = vpop.eup %2840 }
 0x249   :  { %v852_v40 = vmul.f32 %v2841_v17, %v850_v35 }
 0x24a   :  { %v2843_v47 = vpop.eup %2842 }
 0x24b   :  { %v853_v44 = vadd.f32 %v852_v40, %v3318_v22  ;;  %v855_v62 = vsub.f32 1.0, %v2843_v47  ;;  %v860_v5 = vmul.f32 %v2843_v47, %v858_v60 }
 0x24d   :  { %2844 = vtanh.f32 %v853_v44 }
 0x25a   :  { %v2845_v3 = vpop.eup %2844 }
 0x25b   :  { %v856_v4 = vmul.f32 %v2845_v3, %v855_v62 }
 0x25d   :  { %v861_v8 = vadd.f32 %v860_v5, %v856_v4 }
 0x25f   :  { %v866_v11 = vmul.f32 %v3375_v63, %v861_v8 }
 0x261   :  { %v3378_v16 = vadd.f32 %v871_v14, %v866_v11 }
 0x263   :  { %v874_v18 = vpack.c.bf16 %v3378_v16, %v3378_v16 }
 0x265   :  { %v876_v2 = vshrl.u32 %v874_v18, 16 }
 0x267   :  { %912 = vmatmul.mubr.bf16.vlgmr.msra.gmra.mxu1 %v876_v2  ;;  %2543 = vmatmul.mubr.bf16.vlgmr.msra.gmra.mxu0 %v876_v2 }
 0x268   :  { %1010 = vmatpush1.bf16.msra.mxu1 %v3148_v30  ;;  %2547 = vmatpush3.bf16.msra.mxu0 %v3203_v52 }
 0x269   :  { %1011 = vmatprep.subr.bf16.mxu1 %v3151_v31  ;;  %2548 = vmatprep.subr.bf16.mxu0 %v3008_v0 }
 0x26a   :  { %1041 = vmatprep.mubr.bf16.mxu1 %v3010_v1  ;;  %2562 = vmatprep.mubr.msk.bf16.mxu0 %vm3009_vm0, %v3008_v0 }
 0x26c   :  { %1012 = vmatpush1.bf16.msra.mxu1 %v3157_v33  ;;  %2549 = vmatpush3.bf16.msra.mxu0 %v3209_v53 }
 0x26d   :  { %1013 = vmatprep.subr.bf16.mxu1 %v3161_v34  ;;  %2550 = vmatprep.subr.bf16.mxu0 %v3008_v0 }
 0x270   :  { %1014 = vmatpush1.bf16.msra.mxu1 %v3165_v36  ;;  %2551 = vmatpush3.bf16.msra.mxu0 %v3219_v54 }
 0x271   :  { %1015 = vmatprep.subr.bf16.mxu1 %v3168_v37  ;;  %2552 = vmatprep.subr.bf16.mxu0 %v3008_v0 }
 0x274   :  { %1016 = vmatpush1.bf16.msra.mxu1 %v3171_v39  ;;  %2553 = vmatpush3.bf16.msra.mxu0 %v3225_v55 }
 0x275   :  { %1017 = vmatprep.subr.bf16.mxu1 %v3175_v41  ;;  %2554 = vmatprep.subr.bf16.mxu0 %v3008_v0 }
 0x278   :  { %1018 = vmatpush1.bf16.msra.mxu1 %v3177_v42  ;;  %2555 = vmatpush3.bf16.msra.mxu0 %v3231_v56 }
 0x279   :  { %1019 = vmatprep.subr.bf16.mxu1 %v3180_v43  ;;  %2556 = vmatprep.subr.bf16.mxu0 %v3008_v0 }
 0x27c   :  { %1020 = vmatpush1.bf16.msra.mxu1 %v3184_v45  ;;  %2557 = vmatpush3.bf16.msra.mxu0 %v3237_v57 }
 0x27d   :  { %1021 = vmatprep.subr.bf16.mxu1 %v3187_v46  ;;  %2558 = vmatprep.subr.bf16.mxu0 %v3008_v0 }
 0x280   :  { %1022 = vmatpush1.bf16.msra.mxu1 %v3191_v48  ;;  %2559 = vmatpush3.bf16.msra.mxu0 %v3243_v58 }
 0x281   :  { %1023 = vmatprep.subr.bf16.mxu1 %v3194_v49  ;;  %2560 = vmatprep.subr.bf16.mxu0 %v3008_v0 }
 0x284   :  { %1024 = vmatpush1.bf16.msra.mxu1 %v3200_v51  ;;  %2561 = vmatpush3.bf16.msra.mxu0 %v3249_v59 }
 0x285   :  { %1141 = vmatprep.subr.bf16.mxu1 %v3139_v26  ;;  %2566 = vmatprep.subr.bf16.mxu0 %v3008_v0 }
 0x327   :  { %v913_v21 = vpop.f32.mrf.mxu1  ;;  %v954_v19 = vpop.f32.mrf.mxu0 }
 0x328   :  { %v914_v20 = vadd.f32 %v913_v21, %v3294_v15  ;;  %v955_v5 = vadd.f32 %v954_v19, %v3315_v6  ;;  %v999_v21 = vstv %s998_s5  ;;  %v989_v19 = vrot.slane %v3378_v16, 7 }
 0x329   :  { %v915_v25 = vpop.f32.mrf.mxu1  ;;  %v2544_v10 = vpop.f32.mrf.mxu0 }
 0x32a   :  { %v962_v12 = vrot.slane %v914_v20, 6  ;;  %v916_v13 = vadd.f32 %v915_v25, %v3300_v24  ;;  %v981_v8 = vrot.slane %v955_v5, 6 }
 0x32b   :  { %v917_v28 = vpop.f32.mrf.mxu1  ;;  %v957_v29 = vpop.f32.mrf.mxu0 }
 0x32c   :  { %v966_v32 = vadd.f32 %v962_v12, %v3298_v23  ;;  %v963_v44 = vrot.slane %v916_v13, 6  ;;  %v1000_v13 = vmul.f32 %v999_v21, %v3378_v16  ;;  %v996_v28 = vstv %s995_s17  ;;  %s1522_s17 = ssub.f32 1.0, %s1519_s0 }
 0x32d   :  { %v918_v35 = vpop.f32.mrf.mxu1  ;;  %v2545_v17 = vpop.f32.mrf.mxu0 }
 0x32e   :  { %v2284_v40 = vmul.f32 -1.442695, %v966_v32  ;;  %v967_v47 = vadd.f32 %v963_v44, %v3312_v61  ;;  %v1002_v35 = vrot.slane %v1000_v13, 7 }
 0x330   :  { %2846 = vpow2.f32 %v2284_v40  ;;  %v2285_v60 = vmul.f32 -1.442695, %v967_v47  ;;  %v1660_v40 = vsel %vm1659_vm2, %v3324_v50, %v3378_v16 }
 0x332   :  { %2848 = vpow2.f32 %v2285_v60 }
 0x33d   :  { %v2847_v62 = vpop.eup %2846 }
 0x33e   :  { %v974_v3 = vadd.f32 1.0, %v2847_v62 }
 0x33f   :  { %v2849_v4 = vpop.eup %2848 }
 0x340   :  { %2850 = vrcp.f32 %v974_v3  ;;  %v975_v7 = vadd.f32 1.0, %v2849_v4 }
 0x342   :  { %2852 = vrcp.f32 %v975_v7 }
 0x34d   :  { %v2851_v11 = vpop.eup %2850 }
 0x34e   :  { %v983_v14 = vmul.f32 %v2851_v11, %v981_v8 }
 0x34f   :  { %v2853_v2 = vpop.eup %2852 }
 0x350   :  { %v984_v18 = vadd.f32 %v983_v14, %v3318_v22  ;;  %v986_v20 = vsub.f32 1.0, %v2853_v2  ;;  %v991_v12 = vmul.f32 %v2853_v2, %v989_v19 }
 0x352   :  { %2854 = vtanh.f32 %v984_v18 }
 0x35f   :  { %v2855_v25 = vpop.eup %2854 }
 0x360   :  { %v987_v10 = vmul.f32 %v2855_v25, %v986_v20 }
 0x362   :  { %v992_v29 = vadd.f32 %v991_v12, %v987_v10 }
 0x364   :  { %v997_v32 = vmul.f32 %v996_v28, %v992_v29  ;;  %v1129_v28 = vstv %s1128_s19 }
 0x366   :  { %v3428_v17 = vadd.f32 %v1002_v35, %v997_v32 }
 0x368   :  { %v1005_v44 = vpack.c.bf16 %v3428_v17, %v3428_v17  ;;  %v3435_v47 = vsel %vm1661_vm3, %v1660_v40, %v3428_v17  ;;  %v1119_v32 = vrot.slane %v3428_v17, 7 }
 0x36a   :  { %v1007_v60 = vrot.slane %v1005_v44, 1 }
 0x36c   :  { %1042 = vmatmul.mubr.bf16.vlgmr.msra.gmra.mxu1 %v1007_v60  ;;  %2563 = vmatmul.mubr.bf16.vlgmr.msra.gmra.mxu0 %v1007_v60  ;;  %v1130_v60 = vmul.f32 %v1129_v28, %v3428_v17  ;;  %v3495_v17 = vld [vmem:[#allocation6 + $0x94] ss:$12 sps:$4 sm:$0xff]  }
 0x36d   :  { %1142 = vmatpush1.bf16.msra.mxu1 %v3148_v30  ;;  %2567 = vmatpush3.bf16.msra.mxu0 %v3203_v52 }
 0x36e   :  { %1143 = vmatprep.subr.bf16.mxu1 %v3151_v31  ;;  %2568 = vmatprep.subr.bf16.mxu0 %v3008_v0 }
 0x36f   :  { %1173 = vmatprep.mubr.bf16.mxu1 %v3010_v1  ;;  %2582 = vmatprep.mubr.msk.bf16.mxu0 %vm3009_vm0, %v3008_v0 }
 0x371   :  { %1144 = vmatpush1.bf16.msra.mxu1 %v3157_v33  ;;  %2569 = vmatpush3.bf16.msra.mxu0 %v3209_v53 }
 0x372   :  { %1145 = vmatprep.subr.bf16.mxu1 %v3161_v34  ;;  %2570 = vmatprep.subr.bf16.mxu0 %v3008_v0 }
 0x375   :  { %1146 = vmatpush1.bf16.msra.mxu1 %v3165_v36  ;;  %2571 = vmatpush3.bf16.msra.mxu0 %v3219_v54 }
 0x376   :  { %1147 = vmatprep.subr.bf16.mxu1 %v3168_v37  ;;  %2572 = vmatprep.subr.bf16.mxu0 %v3008_v0 }
 0x379   :  { %1148 = vmatpush1.bf16.msra.mxu1 %v3171_v39  ;;  %2573 = vmatpush3.bf16.msra.mxu0 %v3225_v55 }
 0x37a   :  { %1149 = vmatprep.subr.bf16.mxu1 %v3175_v41  ;;  %2574 = vmatprep.subr.bf16.mxu0 %v3008_v0 }
 0x37d   :  { %1150 = vmatpush1.bf16.msra.mxu1 %v3177_v42  ;;  %2575 = vmatpush3.bf16.msra.mxu0 %v3231_v56 }
 0x37e   :  { %1151 = vmatprep.subr.bf16.mxu1 %v3180_v43  ;;  %2576 = vmatprep.subr.bf16.mxu0 %v3008_v0 }
 0x381   :  { %1152 = vmatpush1.bf16.msra.mxu1 %v3184_v45  ;;  %2577 = vmatpush3.bf16.msra.mxu0 %v3237_v57 }
 0x382   :  { %1153 = vmatprep.subr.bf16.mxu1 %v3187_v46  ;;  %2578 = vmatprep.subr.bf16.mxu0 %v3008_v0 }
 0x385   :  { %1154 = vmatpush1.bf16.msra.mxu1 %v3191_v48  ;;  %2579 = vmatpush3.bf16.msra.mxu0 %v3243_v58 }
 0x386   :  { %1155 = vmatprep.subr.bf16.mxu1 %v3194_v49  ;;  %2580 = vmatprep.subr.bf16.mxu0 %v3008_v0 }
 0x389   :  { %1156 = vmatpush1.bf16.msra.mxu1 %v3200_v51  ;;  %2581 = vmatpush3.bf16.msra.mxu0 %v3249_v59 }
 0x38a   :  { %1271 = vmatprep.subr.bf16.mxu1 %v3139_v26  ;;  %2586 = vmatprep.subr.bf16.mxu0 %v3008_v0 }
 0x42c   :  { %v1043_v30 = vpop.f32.mrf.mxu1  ;;  %v1084_v31 = vpop.f32.mrf.mxu0 }
 0x42d   :  { %v1044_v33 = vadd.f32 %v1043_v30, %v3294_v15  ;;  %v1085_v21 = vadd.f32 %v1084_v31, %v3315_v6  ;;  %v1126_v30 = vstv %s1125_s3 }
 0x42e   :  { %v1045_v34 = vpop.f32.mrf.mxu1  ;;  %v2564_v36 = vpop.f32.mrf.mxu0 }
 0x42f   :  { %v1092_v37 = vrot.slane %v1044_v33, 5  ;;  %v1046_v50 = vadd.f32 %v1045_v34, %v3300_v24  ;;  %v1111_v19 = vrot.slane %v1085_v21, 5  ;;  %v1132_v34 = vrot.slane %v1130_v60, 7 }
 0x430   :  { %v1047_v16 = vpop.f32.mrf.mxu1  ;;  %v1087_v62 = vpop.f32.mrf.mxu0 }
 0x431   :  { %v1096_v3 = vadd.f32 %v1092_v37, %v3298_v23  ;;  %v1093_v8 = vrot.slane %v1046_v50, 5 }
 0x432   :  { %v1048_v4 = vpop.f32.mrf.mxu1  ;;  %v2565_v5 = vpop.f32.mrf.mxu0 }
 0x433   :  { %v2286_v7 = vmul.f32 -1.442695, %v1096_v3  ;;  %v1097_v26 = vadd.f32 %v1093_v8, %v3312_v61  ;;  %v3491_v3 = vld [vmem:[#allocation6 + $0xa8] ss:$12 sps:$4 sm:$0xff]   ;;  %v3510_v5 = vld [vmem:[#allocation6 + $0x78] ss:$12 sps:$4 sm:$0xff]  }
 0x434   :  { %v3506_v4 = vld [vmem:[#allocation6 + $0x7c] ss:$12 sps:$4 sm:$0xff]  }
 0x435   :  { %2856 = vpow2.f32 %v2286_v7  ;;  %v2287_v11 = vmul.f32 -1.442695, %v1097_v26  ;;  %v3514_v7 = vld [vmem:[#allocation6 + $0x64] ss:$12 sps:$4 sm:$0xff]  }
 0x437   :  { %2858 = vpow2.f32 %v2287_v11 }
 0x442   :  { %v2857_v14 = vpop.eup %2856 }
 0x443   :  { %v1104_v18 = vadd.f32 1.0, %v2857_v14 }
 0x444   :  { %v2859_v2 = vpop.eup %2858 }
 0x445   :  { %2860 = vrcp.f32 %v1104_v18  ;;  %v1105_v20 = vadd.f32 1.0, %v2859_v2 }
 0x447   :  { %2862 = vrcp.f32 %v1105_v20 }
 0x452   :  { %v2861_v25 = vpop.eup %2860 }
 0x453   :  { %v1113_v10 = vmul.f32 %v2861_v25, %v1111_v19 }
 0x454   :  { %v2863_v13 = vpop.eup %2862 }
 0x455   :  { %v1114_v12 = vadd.f32 %v1113_v10, %v3318_v22  ;;  %v1116_v29 = vsub.f32 1.0, %v2863_v13  ;;  %v1121_v40 = vmul.f32 %v2863_v13, %v1119_v32 }
 0x457   :  { %2864 = vtanh.f32 %v1114_v12 }
 0x464   :  { %v2865_v35 = vpop.eup %2864 }
 0x465   :  { %v1117_v44 = vmul.f32 %v2865_v35, %v1116_v29 }
 0x467   :  { %v1122_v31 = vadd.f32 %v1121_v40, %v1117_v44  ;;  %v1261_v44 = vstv %s1260_s24 }
 0x469   :  { %v1127_v33 = vmul.f32 %v1126_v30, %v1122_v31 }
 0x46b   :  { %v3483_v36 = vadd.f32 %v1132_v34, %v1127_v33 }
 0x46d   :  { %v1135_v37 = vpack.c.bf16 %v3483_v36, %v3483_v36  ;;  %v3489_v50 = vsel %vm1663_vm4, %v3435_v47, %v3483_v36  ;;  %v3502_v47 = vld [vmem:[#allocation6 + $0x90] ss:$12 sps:$4 sm:$0xff]   ;;  %v1251_v30 = vrot.slane %v3483_v36, 7 }
 0x46f   :  { %v1137_v16 = vshrl.u32 %v1135_v37, 16  ;;  %v1262_v37 = vmul.f32 %v1261_v44, %v3483_v36  ;;  %v3579_v36 = vld [vmem:[#allocation6 + $0x4c] ss:$12 sps:$4 sm:$0xff]  }
 0x471   :  { %v1139_v62 = vrot.slane %v1137_v16, 1  ;;  %v1258_v16 = vstv %s1257_s23 }
 0x473   :  { %1174 = vmatmul.mubr.bf16.vlgmr.msra.gmra.mxu1 %v1139_v62  ;;  %2583 = vmatmul.mubr.bf16.vlgmr.msra.gmra.mxu0 %v1139_v62 }
 0x474   :  { %1272 = vmatpush1.bf16.msra.mxu1 %v3491_v3  ;;  %2587 = vmatpush3.bf16.msra.mxu0 %v3203_v52 }
 0x475   :  { %1273 = vmatprep.subr.bf16.mxu1 %v3495_v17  ;;  %2588 = vmatprep.subr.bf16.mxu0 %v3008_v0 }
 0x476   :  { %1303 = vmatprep.mubr.bf16.mxu1 %v3010_v1  ;;  %2602 = vmatprep.mubr.msk.bf16.mxu0 %vm3009_vm0, %v3008_v0 }
 0x478   :  { %1274 = vmatpush1.bf16.msra.mxu1 %v3502_v47  ;;  %2589 = vmatpush3.bf16.msra.mxu0 %v3209_v53 }
 0x479   :  { %1275 = vmatprep.subr.bf16.mxu1 %v3506_v4  ;;  %2590 = vmatprep.subr.bf16.mxu0 %v3008_v0 }
 0x47c   :  { %1276 = vmatpush1.bf16.msra.mxu1 %v3510_v5  ;;  %2591 = vmatpush3.bf16.msra.mxu0 %v3219_v54 }
 0x47d   :  { %1277 = vmatprep.subr.bf16.mxu1 %v3514_v7  ;;  %2592 = vmatprep.subr.bf16.mxu0 %v3008_v0 }
 0x480   :  { %1278 = vmatpush1.bf16.msra.mxu1 %v3171_v39  ;;  %2593 = vmatpush3.bf16.msra.mxu0 %v3225_v55  ;;  %v3536_v39 = vld [vmem:[#allocation6 + $0xac] ss:$12 sps:$4 sm:$0xff]  }
 0x481   :  { %1279 = vmatprep.subr.bf16.mxu1 %v3175_v41  ;;  %2594 = vmatprep.subr.bf16.mxu0 %v3008_v0 }
 0x484   :  { %1280 = vmatpush1.bf16.msra.mxu1 %v3177_v42  ;;  %2595 = vmatpush3.bf16.msra.mxu0 %v3231_v56 }
 0x485   :  { %1281 = vmatprep.subr.bf16.mxu1 %v3180_v43  ;;  %2596 = vmatprep.subr.bf16.mxu0 %v3008_v0 }
 0x488   :  { %1282 = vmatpush1.bf16.msra.mxu1 %v3184_v45  ;;  %2597 = vmatpush3.bf16.msra.mxu0 %v3237_v57 }
 0x489   :  { %1283 = vmatprep.subr.bf16.mxu1 %v3187_v46  ;;  %2598 = vmatprep.subr.bf16.mxu0 %v3008_v0 }
 0x48c   :  { %1284 = vmatpush1.bf16.msra.mxu1 %v3191_v48  ;;  %2599 = vmatpush3.bf16.msra.mxu0 %v3243_v58 }
 0x48d   :  { %1285 = vmatprep.subr.bf16.mxu1 %v3194_v49  ;;  %2600 = vmatprep.subr.bf16.mxu0 %v3008_v0 }
 0x490   :  { %1286 = vmatpush1.bf16.msra.mxu1 %v3200_v51  ;;  %2601 = vmatpush3.bf16.msra.mxu0 %v3249_v59 }
 0x491   :  { %1403 = vmatprep.subr.bf16.mxu1 %v3536_v39  ;;  %2606 = vmatprep.subr.bf16.mxu0 %v3008_v0 }
 0x533   :  { %v1175_v41 = vpop.f32.mrf.mxu1  ;;  %v1216_v42 = vpop.f32.mrf.mxu0 }
 0x534   :  { %v1176_v43 = vadd.f32 %v1175_v41, %v3294_v15  ;;  %v1217_v12 = vadd.f32 %v1216_v42, %v3315_v6  ;;  %v1264_v42 = vrot.slane %v1262_v37, 7 }
 0x535   :  { %v1177_v45 = vpop.f32.mrf.mxu1  ;;  %v2584_v46 = vpop.f32.mrf.mxu0 }
 0x536   :  { %v1224_v48 = vrot.slane %v1176_v43, 4  ;;  %v1178_v49 = vadd.f32 %v1177_v45, %v3300_v24  ;;  %v1243_v28 = vrot.slane %v1217_v12, 4 }
 0x537   :  { %v1179_v8 = vpop.f32.mrf.mxu1  ;;  %v1219_v26 = vpop.f32.mrf.mxu0 }
 0x538   :  { %v1228_v51 = vadd.f32 %v1224_v48, %v3298_v23  ;;  %v1225_v2 = vrot.slane %v1178_v49, 4  ;;  %v3599_v49 = vld [vmem:[#allocation6 + $0x18] ss:$12 sps:$4 sm:$0xff]   ;;  %v3607_v8 = vld [vmem:[#allocation6] ss:$12 sps:$4 sm:$0xff]  }
 0x539   :  { %v1180_v11 = vpop.f32.mrf.mxu1  ;;  %v2585_v14 = vpop.f32.mrf.mxu0 }
 0x53a   :  { %v2288_v18 = vmul.f32 -1.442695, %v1228_v51  ;;  %v1229_v21 = vadd.f32 %v1225_v2, %v3312_v61 }
 0x53c   :  { %2866 = vpow2.f32 %v2288_v18  ;;  %v2289_v20 = vmul.f32 -1.442695, %v1229_v21 }
 0x53e   :  { %2868 = vpow2.f32 %v2289_v20 }
 0x549   :  { %v2867_v19 = vpop.eup %2866 }
 0x54a   :  { %v1236_v25 = vadd.f32 1.0, %v2867_v19 }
 0x54b   :  { %v2869_v10 = vpop.eup %2868 }
 0x54c   :  { %2870 = vrcp.f32 %v1236_v25  ;;  %v1237_v13 = vadd.f32 1.0, %v2869_v10 }
 0x54e   :  { %2872 = vrcp.f32 %v1237_v13 }
 0x559   :  { %v2871_v29 = vpop.eup %2870 }
 0x55a   :  { %v1245_v32 = vmul.f32 %v2871_v29, %v1243_v28 }
 0x55b   :  { %v2873_v40 = vpop.eup %2872 }
 0x55c   :  { %v1246_v35 = vadd.f32 %v1245_v32, %v3318_v22  ;;  %v1248_v60 = vsub.f32 1.0, %v2873_v40  ;;  %v1253_v34 = vmul.f32 %v2873_v40, %v1251_v30 }
 0x55e   :  { %2874 = vtanh.f32 %v1246_v35 }
 0x56b   :  { %v2875_v31 = vpop.eup %2874 }
 0x56c   :  { %v1249_v33 = vmul.f32 %v2875_v31, %v1248_v60 }
 0x56e   :  { %v1254_v62 = vadd.f32 %v1253_v34, %v1249_v33  ;;  %v1391_v33 = vstv %s1390_s27 }
 0x570   :  { %v1259_v41 = vmul.f32 %v1258_v16, %v1254_v62 }
 0x572   :  { %v3551_v43 = vadd.f32 %v1264_v42, %v1259_v41 }
 0x574   :  { %v1267_v45 = vpack.c.bf16 %v3551_v43, %v3551_v43  ;;  %v3558_v46 = vsel %vm1665_vm5, %v3489_v50, %v3551_v43  ;;  %v3591_v50 = vld [vmem:[#allocation6 + $0x30] ss:$12 sps:$4 sm:$0xff]   ;;  %v1381_v37 = vrot.slane %v3551_v43, 7  ;;  %v1392_v42 = vmul.f32 %v1391_v33, %v3551_v43 }
 0x575   :  { %v2930_v43 = vld [vmem:[#allocation6 + $0xb0] ss:$12 sps:$4 sm:$0xff]  }
 0x576   :  { %v1269_v48 = vrot.slane %v1267_v45, 2  ;;  %v1388_v45 = vstv %s1387_s26 }
 0x578   :  { %1304 = vmatmul.mubr.bf16.vlgmr.msra.gmra.mxu1 %v1269_v48  ;;  %2603 = vmatmul.mubr.bf16.vlgmr.msra.gmra.mxu0 %v1269_v48 }
 0x579   :  { %1404 = vmatpush1.bf16.msra.mxu1 %v3491_v3  ;;  %2607 = vmatpush3.bf16.msra.mxu0 %v3203_v52  ;;  %v3575_v52 = vld [vmem:[#allocation6 + $0x60] ss:$12 sps:$4 sm:$0xff]  }
 0x57a   :  { %1405 = vmatprep.subr.bf16.mxu1 %v3495_v17  ;;  %2608 = vmatprep.subr.bf16.mxu0 %v3008_v0 }
 0x57b   :  { %1435 = vmatprep.mubr.bf16.mxu1 %v3010_v1  ;;  %2622 = vmatprep.mubr.msk.bf16.mxu0 %vm3009_vm0, %v3008_v0 }
 0x57d   :  { %1406 = vmatpush1.bf16.msra.mxu1 %v3502_v47  ;;  %2609 = vmatpush3.bf16.msra.mxu0 %v3209_v53  ;;  %v3583_v53 = vld [vmem:[#allocation6 + $0x48] ss:$12 sps:$4 sm:$0xff]  }
 0x57e   :  { %1407 = vmatprep.subr.bf16.mxu1 %v3506_v4  ;;  %2610 = vmatprep.subr.bf16.mxu0 %v3008_v0 }
 0x581   :  { %1408 = vmatpush1.bf16.msra.mxu1 %v3510_v5  ;;  %2611 = vmatpush3.bf16.msra.mxu0 %v3219_v54  ;;  %v3587_v54 = vld [vmem:[#allocation6 + $0x34] ss:$12 sps:$4 sm:$0xff]  }
 0x582   :  { %1409 = vmatprep.subr.bf16.mxu1 %v3514_v7  ;;  %2612 = vmatprep.subr.bf16.mxu0 %v3008_v0 }
 0x585   :  { %1410 = vmatpush1.bf16.msra.mxu1 %v3575_v52  ;;  %2613 = vmatpush3.bf16.msra.mxu0 %v3225_v55  ;;  %v3595_v55 = vld [vmem:[#allocation6 + $0x1c] ss:$12 sps:$4 sm:$0xff]  }
 0x586   :  { %1411 = vmatprep.subr.bf16.mxu1 %v3579_v36  ;;  %2614 = vmatprep.subr.bf16.mxu0 %v3008_v0 }
 0x589   :  { %1412 = vmatpush1.bf16.msra.mxu1 %v3583_v53  ;;  %2615 = vmatpush3.bf16.msra.mxu0 %v3231_v56  ;;  %v3603_v56 = vld [vmem:[#allocation6 + $0x4] ss:$12 sps:$4 sm:$0xff]  }
 0x58a   :  { %1413 = vmatprep.subr.bf16.mxu1 %v3587_v54  ;;  %2616 = vmatprep.subr.bf16.mxu0 %v3008_v0 }
 0x58d   :  { %1414 = vmatpush1.bf16.msra.mxu1 %v3591_v50  ;;  %2617 = vmatpush3.bf16.msra.mxu0 %v3237_v57 }
 0x58e   :  { %1415 = vmatprep.subr.bf16.mxu1 %v3595_v55  ;;  %2618 = vmatprep.subr.bf16.mxu0 %v3008_v0 }
 0x591   :  { %1416 = vmatpush1.bf16.msra.mxu1 %v3599_v49  ;;  %2619 = vmatpush3.bf16.msra.mxu0 %v3243_v58 }
 0x592   :  { %1417 = vmatprep.subr.bf16.mxu1 %v3603_v56  ;;  %2620 = vmatprep.subr.bf16.mxu0 %v3008_v0 }
 0x595   :  { %1418 = vmatpush1.bf16.msra.mxu1 %v3607_v8  ;;  %2621 = vmatpush3.bf16.msra.mxu0 %v3249_v59 }
 0x596   :  { %1533 = vmatprep.subr.bf16.mxu1 %v3536_v39  ;;  %2626 = vmatprep.subr.bf16.mxu0 %v3008_v0 }
 0x638   :  { %v1305_v57 = vpop.f32.mrf.mxu1  ;;  %v1346_v26 = vpop.f32.mrf.mxu0 }
 0x639   :  { %v1306_v58 = vadd.f32 %v1305_v57, %v3294_v15  ;;  %v1347_v32 = vadd.f32 %v1346_v26, %v3315_v6  ;;  %v1394_v26 = vrot.slane %v1392_v42, 7 }
 0x63a   :  { %v1307_v51 = vpop.f32.mrf.mxu1  ;;  %v2604_v11 = vpop.f32.mrf.mxu0 }
 0x63b   :  { %v1354_v14 = vrot.slane %v1306_v58, 3  ;;  %v1308_v18 = vadd.f32 %v1307_v51, %v3300_v24  ;;  %v1373_v40 = vrot.slane %v1347_v32, 3 }
 0x63c   :  { %v1309_v2 = vpop.f32.mrf.mxu1  ;;  %v1349_v21 = vpop.f32.mrf.mxu0 }
 0x63d   :  { %v1358_v20 = vadd.f32 %v1354_v14, %v3298_v23  ;;  %v1355_v10 = vrot.slane %v1308_v18, 3 }
 0x63e   :  { %v1310_v19 = vpop.f32.mrf.mxu1  ;;  %v2605_v25 = vpop.f32.mrf.mxu0 }
 0x63f   :  { %v2290_v59 = vmul.f32 -1.442695, %v1358_v20  ;;  %v1359_v39 = vadd.f32 %v1355_v10, %v3312_v61 }
 0x641   :  { %2876 = vpow2.f32 %v2290_v59  ;;  %v2291_v12 = vmul.f32 -1.442695, %v1359_v39 }
 0x643   :  { %2878 = vpow2.f32 %v2291_v12 }
 0x64e   :  { %v2877_v13 = vpop.eup %2876 }
 0x64f   :  { %v1366_v28 = vadd.f32 1.0, %v2877_v13 }
 0x650   :  { %v2879_v29 = vpop.eup %2878 }
 0x651   :  { %2880 = vrcp.f32 %v1366_v28  ;;  %v1367_v35 = vadd.f32 1.0, %v2879_v29 }
 0x653   :  { %2882 = vrcp.f32 %v1367_v35 }
 0x65e   :  { %v2881_v44 = vpop.eup %2880 }
 0x65f   :  { %v1375_v60 = vmul.f32 %v2881_v44, %v1373_v40 }
 0x660   :  { %v2883_v31 = vpop.eup %2882 }
 0x661   :  { %v1376_v30 = vadd.f32 %v1375_v60, %v3318_v22  ;;  %v1378_v34 = vsub.f32 1.0, %v2883_v31  ;;  %v1383_v62 = vmul.f32 %v2883_v31, %v1381_v37  ;;  %v1523_v60 = vstv %s1522_s17 }
 0x663   :  { %2884 = vtanh.f32 %v1376_v30 }
 0x670   :  { %v2885_v16 = vpop.eup %2884 }
 0x671   :  { %v1379_v41 = vmul.f32 %v2885_v16, %v1378_v34 }
 0x673   :  { %v1384_v48 = vadd.f32 %v1383_v62, %v1379_v41  ;;  %v1520_v62 = vstv %s1519_s0  ;;  %s1652_s0 = ssub.f32 1.0, %s1649_s30 }
 0x675   :  { %v1389_v57 = vmul.f32 %v1388_v45, %v1384_v48 }
 0x677   :  { %v3624_v58 = vadd.f32 %v1394_v26, %v1389_v57 }
 0x679   :  { %v1397_v51 = vpack.c.bf16 %v3624_v58, %v3624_v58  ;;  %v3630_v11 = vsel %vm1667_vm6, %v3558_v46, %v3624_v58  ;;  %v2931_v46 = vld [vmem:[#allocation6 + $0x98] ss:$12 sps:$4 sm:$0xff]   ;;  %v1513_v31 = vrot.slane %v3624_v58, 7  ;;  %v1524_v16 = vmul.f32 %v1523_v60, %v3624_v58 }
 0x67a   :  { %v2800_v58 = vld [vmem:[%s3828_s9 + $0x38] sm:$0xff]  }
 0x67b   :  { %v1399_v14 = vshrl.u32 %v1397_v51, 16  ;;  %v1526_v45 = vrot.slane %v1524_v16, 7  ;;  %v2809_v16 = vld [vmem:[%s3830_s11] sm:$0xff]  }
 0x67d   :  { %v1401_v18 = vrot.slane %v1399_v14, 2  ;;  %v2802_v14 = vld [vmem:[%s3828_s9 + $0x28] sm:$0xff]  }
 0x67f   :  { %1436 = vmatmul.mubr.bf16.vlgmr.msra.gmra.mxu1 %v1401_v18  ;;  %2623 = vmatmul.mubr.bf16.vlgmr.msra.gmra.mxu0 %v1401_v18  ;;  %v2803_v18 = vld [vmem:[%s3828_s9 + $0x20] sm:$0xff]  }
 0x680   :  { %1534 = vmatpush1.bf16.msra.mxu1 %v3491_v3  ;;  %2627 = vmatpush3.bf16.msra.mxu0 %v2930_v43  ;;  %v2932_v3 = vld [vmem:[#allocation6 + $0x80] ss:$12 sps:$4 sm:$0xff]   ;;  %v2804_v43 = vld [vmem:[%s3828_s9 + $0x18] sm:$0xff]  }
 0x681   :  { %1535 = vmatprep.subr.bf16.mxu1 %v3495_v17  ;;  %2628 = vmatprep.subr.bf16.mxu0 %v3008_v0  ;;  %v2934_v17 = vld [vmem:[#allocation6 + $0x50] ss:$12 sps:$4 sm:$0xff]  }
 0x682   :  { %1565 = vmatprep.mubr.bf16.mxu1 %v3010_v1  ;;  %2642 = vmatprep.mubr.msk.bf16.mxu0 %vm3009_vm0, %v3008_v0  ;;  %v2933_v1 = vld [vmem:[#allocation6 + $0x68] ss:$12 sps:$4 sm:$0xff]  }
 0x684   :  { %1536 = vmatpush1.bf16.msra.mxu1 %v3502_v47  ;;  %2629 = vmatpush3.bf16.msra.mxu0 %v2931_v46  ;;  %v2935_v47 = vld [vmem:[#allocation6 + $0x38] ss:$12 sps:$4 sm:$0xff]   ;;  %v2805_v46 = vld [vmem:[%s3828_s9 + $0x10] sm:$0xff]  }
 0x685   :  { %1537 = vmatprep.subr.bf16.mxu1 %v3506_v4  ;;  %2630 = vmatprep.subr.bf16.mxu0 %v3008_v0  ;;  %v2936_v4 = vld [vmem:[#allocation6 + $0x20] ss:$12 sps:$4 sm:$0xff]  }
 0x688   :  { %1538 = vmatpush1.bf16.msra.mxu1 %v3510_v5  ;;  %2631 = vmatpush3.bf16.msra.mxu0 %v2932_v3  ;;  %v2937_v5 = vld [vmem:[#allocation6 + $0x8] ss:$12 sps:$4 sm:$0xff]  }
 0x689   :  { %1539 = vmatprep.subr.bf16.mxu1 %v3514_v7  ;;  %2632 = vmatprep.subr.bf16.mxu0 %v3008_v0  ;;  %v2806_v3 = vld [vmem:[%s3828_s9 + $0x8] sm:$0xff]  }
 0x68c   :  { %1540 = vmatpush1.bf16.msra.mxu1 %v3575_v52  ;;  %2633 = vmatpush3.bf16.msra.mxu0 %v2933_v1  ;;  %v2807_v1 = vld [vmem:[%s3828_s9] sm:$0xff]  }
 0x68d   :  { %1541 = vmatprep.subr.bf16.mxu1 %v3579_v36  ;;  %2634 = vmatprep.subr.bf16.mxu0 %v3008_v0 }
 0x690   :  { %1542 = vmatpush1.bf16.msra.mxu1 %v3583_v53  ;;  %2635 = vmatpush3.bf16.msra.mxu0 %v2934_v17 }
 0x691   :  { %1543 = vmatprep.subr.bf16.mxu1 %v3587_v54  ;;  %2636 = vmatprep.subr.bf16.mxu0 %v3008_v0 }
 0x694   :  { %1544 = vmatpush1.bf16.msra.mxu1 %v3591_v50  ;;  %2637 = vmatpush3.bf16.msra.mxu0 %v2935_v47 }
 0x695   :  { %1545 = vmatprep.subr.bf16.mxu1 %v3595_v55  ;;  %2638 = vmatprep.subr.bf16.mxu0 %v3008_v0 }
 0x698   :  { %1546 = vmatpush1.bf16.msra.mxu1 %v3599_v49  ;;  %2639 = vmatpush3.bf16.msra.mxu0 %v2936_v4 }
 0x699   :  { %1547 = vmatprep.subr.bf16.mxu1 %v3603_v56  ;;  %2640 = vmatprep.subr.bf16.mxu0 %v3008_v0 }
 0x69c   :  { %1548 = vmatpush1.bf16.msra.mxu1 %v3607_v8  ;;  %2641 = vmatpush3.bf16.msra.mxu0 %v2937_v5 }
 0x69d   :  { %2646 = vmatprep.subr.bf16.mxu1 %v3008_v0  ;;  %2685 = vmatprep.subr.bf16.mxu0 %v3008_v0 }
 0x73f   :  { %v1437_v7 = vpop.f32.mrf.mxu1  ;;  %v1478_v52 = vpop.f32.mrf.mxu0 }
 0x740   :  { %v1438_v36 = vadd.f32 %v1437_v7, %v3294_v15  ;;  %v1479_v13 = vadd.f32 %v1478_v52, %v3315_v6 }
 0x741   :  { %v1439_v53 = vpop.f32.mrf.mxu1  ;;  %v2624_v54 = vpop.f32.mrf.mxu0 }
 0x742   :  { %v1486_v50 = vrot.slane %v1438_v36, 2  ;;  %v1440_v55 = vadd.f32 %v1439_v53, %v3300_v24  ;;  %v1505_v29 = vrot.slane %v1479_v13, 2 }
 0x743   :  { %v1441_v49 = vpop.f32.mrf.mxu1  ;;  %v1481_v56 = vpop.f32.mrf.mxu0 }
 0x744   :  { %v1490_v2 = vadd.f32 %v1486_v50, %v3298_v23  ;;  %v1487_v19 = vrot.slane %v1440_v55, 2 }
 0x745   :  { %v1442_v8 = vpop.f32.mrf.mxu1  ;;  %v2625_v21 = vpop.f32.mrf.mxu0 }
 0x746   :  { %v2292_v20 = vmul.f32 -1.442695, %v1490_v2  ;;  %v1491_v25 = vadd.f32 %v1487_v19, %v3312_v61 }
 0x748   :  { %2886 = vpow2.f32 %v2292_v20  ;;  %v2293_v59 = vmul.f32 -1.442695, %v1491_v25 }
 0x74a   :  { %2888 = vpow2.f32 %v2293_v59 }
 0x755   :  { %v2887_v10 = vpop.eup %2886 }
 0x756   :  { %v1498_v39 = vadd.f32 1.0, %v2887_v10 }
 0x757   :  { %v2889_v12 = vpop.eup %2888 }
 0x758   :  { %2890 = vrcp.f32 %v1498_v39  ;;  %v1499_v28 = vadd.f32 1.0, %v2889_v12  ;;  %v1653_v12 = vstv %s1652_s0 }
 0x75a   :  { %2892 = vrcp.f32 %v1499_v28 }
 0x765   :  { %v2891_v32 = vpop.eup %2890 }
 0x766   :  { %v1507_v35 = vmul.f32 %v2891_v32, %v1505_v29 }
 0x767   :  { %v2893_v44 = vpop.eup %2892 }
 0x768   :  { %v1508_v40 = vadd.f32 %v1507_v35, %v3318_v22  ;;  %v1510_v30 = vsub.f32 1.0, %v2893_v44  ;;  %v1515_v37 = vmul.f32 %v2893_v44, %v1513_v31 }
 0x76a   :  { %2894 = vtanh.f32 %v1508_v40  ;;  %v1650_v40 = vstv %s1649_s30 }
 0x777   :  { %v2895_v33 = vpop.eup %2894 }
 0x778   :  { %v1511_v34 = vmul.f32 %v2895_v33, %v1510_v30 }
 0x77a   :  { %v1516_v41 = vadd.f32 %v1515_v37, %v1511_v34  ;;  %v2808_v37 = vld [vmem:[%s3830_s11 + $0x8] sm:$0xff]  }
 0x77c   :  { %v1521_v42 = vmul.f32 %v1520_v62, %v1516_v41  ;;  %v2296_v62 = vld [vmem:[%s3829_s10] ss:$0 sm:$0xff] }
 0x77e   :  { %v3670_v48 = vadd.f32 %v1526_v45, %v1521_v42 }
 0x780   :  { %v1529_v57 = vpack.c.bf16 %v3670_v48, %v3670_v48  ;;  %v3676_v26 = vsel %vm1669_vm7, %v3630_v11, %v3670_v48  ;;  %v2801_v11 = vld [vmem:[%s3828_s9 + $0x30] sm:$0xff]   ;;  %v1654_v35 = vmul.f32 %v1653_v12, %v3670_v48 }
 0x782   :  { %v1531_v51 = vrot.slane %v1529_v57, 3  ;;  %v1656_v30 = vrot.slane %v1654_v35, 7  ;;  %v2819_v35 = vld [vmem:[%s3833_s14 + $0x10] sm:$0xff]  }
 0x784   :  { %1566 = vmatmul.mubr.bf16.vlgmr.msra.gmra.mxu1 %v1531_v51  ;;  %2643 = vmatmul.mubr.bf16.vlgmr.msra.gmra.mxu0 %v1531_v51 }
 0x785   :  { %2662 = vmatprep.mubr.msk.bf16.mxu1 %vm3009_vm0, %v3008_v0  ;;  %2701 = vmatprep.mubr.msk.bf16.mxu0 %vm3009_vm0, %v3008_v0 }
 0x786   :  { %2647 = vmatpush3.bf16.msra.mxu1 %v2800_v58 }
 0x787   :  { %2648 = vmatprep.subr.bf16.mxu1 %v3008_v0 }
 0x78a   :  { %2649 = vmatpush3.bf16.msra.mxu1 %v2801_v11 }
 0x78b   :  { %2650 = vmatprep.subr.bf16.mxu1 %v3008_v0 }
 0x78e   :  { %2651 = vmatpush3.bf16.msra.mxu1 %v2802_v14 }
 0x78f   :  { %2652 = vmatprep.subr.bf16.mxu1 %v3008_v0 }
 0x792   :  { %2653 = vmatpush3.bf16.msra.mxu1 %v2803_v18  ;;  %v3011_v18 = vmov 64  }
 0x793   :  { %2654 = vmatprep.subr.bf16.mxu1 %v3008_v0  ;;  %2726 = vset.pattern.permute.xlu1 %v3011_v18 }
 0x794   :  { %2727 = vset.pattern.permute.xlu0 %v3011_v18 }
 0x796   :  { %2655 = vmatpush3.bf16.msra.mxu1 %v2804_v43  ;;  %v1792_v43 = vld [vmem:[%s3831_s12] sm:$0x1]  ;;  %s3012_s12 = smov [#allocation8]  }
 0x797   :  { %2656 = vmatprep.subr.bf16.mxu1 %v3008_v0  ;;  %s2212_s4 = sshll.u32 %s3012_s12, 4  ;;  %s2213_s4 = int_to_ptr.vmem [resolvable:$true] %s2212_s4 }
 0x798   :  { %s2982_s22 = scalar_lea.vmem %s2213_s4, 32  ;;  %p2983_p5 = scmp.lt.s32.totalorder %s2213_s4, %s2213_s4 }
 0x79a   :  { %2657 = vmatpush3.bf16.msra.mxu1 %v2805_v46 }
 0x79b   :  { %2658 = vmatprep.subr.bf16.mxu1 %v3008_v0 }
 0x79e   :  { %2659 = vmatpush3.bf16.msra.mxu1 %v2806_v3 }
 0x79f   :  { %2660 = vmatprep.subr.bf16.mxu1 %v3008_v0 }
 0x7a2   :  { %2661 = vmatpush3.bf16.msra.mxu1 %v2807_v1 }
 0x7a3   :  { %2666 = vmatprep.subr.bf16.mxu1 %v3008_v0 }
 0x844   :  { %v1567_v17 = vpop.f32.mrf.mxu1  ;;  %v1608_v47 = vpop.f32.mrf.mxu0 }
 0x845   :  { %v1568_v4 = vadd.f32 %v1567_v17, %v3294_v15  ;;  %v1609_v25 = vadd.f32 %v1608_v47, %v3315_v6  ;;  %v1643_v6 = vrot.slane %v3670_v48, 7  ;;  %v1936_v17 = vand.u32 127, %v235_v9 }
 0x846   :  { %v1569_v5 = vpop.f32.mrf.mxu1  ;;  %v2644_v7 = vpop.f32.mrf.mxu0 }
 0x847   :  { %v1616_v52 = vrot.slane %v1568_v4, 1  ;;  %v1570_v36 = vadd.f32 %v1569_v5, %v3300_v24  ;;  %v1635_v59 = vrot.slane %v1609_v25, 1  ;;  %v1938_v4 = vstv %s2311_s21  ;;  %v2810_v25 = vld [vmem:[%s3832_s13 + $0x38] sm:$0xff]  }
 0x848   :  { %v1571_v53 = vpop.f32.mrf.mxu1  ;;  %v1611_v54 = vpop.f32.mrf.mxu0  ;;  %vm1939_vm10 = vcmp.lt.s32.totalorder %v1936_v17, %v1938_v4  ;;  %2686 = vmatpush3.bf16.msra.mxu0 %v2810_v25 }
 0x849   :  { %v1620_v50 = vadd.f32 %v1616_v52, %v3298_v23  ;;  %v1617_v2 = vrot.slane %v1570_v36, 1  ;;  %2687 = vmatprep.subr.bf16.mxu0 %v3008_v0 }
 0x84a   :  { %v1572_v55 = vpop.f32.mrf.mxu1  ;;  %v2645_v49 = vpop.f32.mrf.mxu0 }
 0x84b   :  { %v2294_v56 = vmul.f32 -1.442695, %v1620_v50  ;;  %v1621_v8 = vadd.f32 %v1617_v2, %v3312_v61 }
 0x84d   :  { %2896 = vpow2.f32 %v2294_v56  ;;  %v2295_v21 = vmul.f32 -1.442695, %v1621_v8 }
 0x84f   :  { %2898 = vpow2.f32 %v2295_v21 }
 0x85a   :  { %v2897_v20 = vpop.eup %2896 }
 0x85b   :  { %v1628_v15 = vadd.f32 1.0, %v2897_v20 }
 0x85c   :  { %v2899_v19 = vpop.eup %2898 }
 0x85d   :  { %2900 = vrcp.f32 %v1628_v15  ;;  %v1629_v24 = vadd.f32 1.0, %v2899_v19  ;;  %v1954_v15 = vld [vmem:[%s3821_s2] sm:$0xf] }
 0x85e   :  { %v1960_v19 = vsel %vm1665_vm5, %v1954_v15, 0 }
 0x85f   :  { %2902 = vrcp.f32 %v1629_v24  ;;  %v2811_v24 = vld [vmem:[%s3832_s13 + $0x30] sm:$0xff]  }
 0x860   :  { %2688 = vmatpush3.bf16.msra.mxu0 %v2811_v24 }
 0x861   :  { %2689 = vmatprep.subr.bf16.mxu0 %v3008_v0 }
 0x86a   :  { %v2901_v10 = vpop.eup %2900 }
 0x86b   :  { %v1637_v23 = vmul.f32 %v2901_v10, %v1635_v59  ;;  %v2812_v59 = vld [vmem:[%s3832_s13 + $0x28] sm:$0xff]   ;;  %v2813_v10 = vld [vmem:[%s3832_s13 + $0x20] sm:$0xff]  }
 0x86c   :  { %v2903_v61 = vpop.eup %2902  ;;  %2690 = vmatpush3.bf16.msra.mxu0 %v2812_v59 }
 0x86d   :  { %v1638_v39 = vadd.f32 %v1637_v23, %v3318_v22  ;;  %v1640_v13 = vsub.f32 1.0, %v2903_v61  ;;  %v1645_v32 = vmul.f32 %v2903_v61, %v1643_v6  ;;  %2691 = vmatprep.subr.bf16.mxu0 %v3008_v0  ;;  %v2814_v23 = vld [vmem:[%s3832_s13 + $0x18] sm:$0xff]   ;;  %v2815_v6 = vld [vmem:[%s3832_s13 + $0x10] sm:$0xff]  }
 0x86f   :  { %2904 = vtanh.f32 %v1638_v39 }
 0x870   :  { %2692 = vmatpush3.bf16.msra.mxu0 %v2813_v10 }
 0x871   :  { %2693 = vmatprep.subr.bf16.mxu0 %v3008_v0 }
 0x874   :  { %2694 = vmatpush3.bf16.msra.mxu0 %v2814_v23 }
 0x875   :  { %2695 = vmatprep.subr.bf16.mxu0 %v3008_v0 }
 0x878   :  { %2696 = vmatpush3.bf16.msra.mxu0 %v2815_v6 }
 0x879   :  { %2697 = vmatprep.subr.bf16.mxu0 %v3008_v0 }
 0x87c   :  { %v2905_v28 = vpop.eup %2904 }
 0x87d   :  { %v1641_v29 = vmul.f32 %v2905_v28, %v1640_v13  ;;  %v2816_v28 = vld [vmem:[%s3832_s13 + $0x8] sm:$0xff]  }
 0x87e   :  { %2698 = vmatpush3.bf16.msra.mxu0 %v2816_v28 }
 0x87f   :  { %v1646_v44 = vadd.f32 %v1645_v32, %v1641_v29  ;;  %2699 = vmatprep.subr.bf16.mxu0 %v3008_v0  ;;  %v2817_v29 = vld [vmem:[%s3832_s13] sm:$0xff]   ;;  %v2818_v32 = vld [vmem:[%s3833_s14 + $0x18] sm:$0xff]  }
 0x881   :  { %v1651_v60 = vmul.f32 %v1650_v40, %v1646_v44 }
 0x882   :  { %2700 = vmatpush3.bf16.msra.mxu0 %v2817_v29 }
 0x883   :  { %v1658_v22 = vadd.f32 %v1656_v30, %v1651_v60 }
 0x885   :  { %v1672_v31 = vsel %vm1671_vm8, %v3676_v26, %v1658_v22 }
 0x886   :  { %v1673_v33 = vmax.f32 %v1672_v31, 0.0 }
 0x888   :  { %v1674_v34 = vpack.c.bf16 %v1673_v33, %v1673_v33 }
 0x88a   :  { %2663 = vmatmul.mubr.bf16.vlgmr.msra.gmra.mxu1 %v1674_v34 }
 0x88b   :  { %2670 = vmatprep.mubr.msk.bf16.mxu1 %vm3009_vm0, %v3008_v0  ;;  %2667 = vmatpush3.bf16.msra.mxu1 %v2808_v37 }
 0x88c   :  { %2668 = vmatprep.subr.bf16.mxu1 %v3008_v0 }
 0x88f   :  { %2669 = vmatpush3.bf16.msra.mxu1 %v2809_v16 }
 0x890   :  { %2674 = vmatprep.subr.mxu1 %v3008_v0 }
 0x94a   :  { %v1780_v41 = vpop.f32.mrf.mxu1 }
 0x94b   :  { %v1781_v42 = vadd.f32 %v2296_v62, %v1780_v41 }
 0x94c   :  { %v2664_v45 = vpop.f32.mrf.mxu1 }
 0x94d   :  { %v1786_v48 = vmax.f32 %v1781_v42, 0.0  ;;  %v1860_v14 = vrot.slane %v1781_v42, 7  ;;  %v2820_v45 = vld [vmem:[%s3833_s14 + $0x8] sm:$0xff]  }
 0x94e   :  { %v1783_v57 = vpop.f32.mrf.mxu1 }
 0x94f   :  { %v1787_v26 = vpack.c.bf16 %v1786_v48, %v1786_v48 }
 0x950   :  { %v2665_v51 = vpop.f32.mrf.mxu1 }
 0x951   :  { %v1794_v58 = vshrl.u32 %v1787_v26, 16 }
 0x953   :  { %v1796_v11 = vrot.slane %v1794_v58, 3 }
 0x955   :  { %2671 = vmatmul.mubr.msk.bf16.vlgmr.msra.gmra.mxu1 %vm1809_vm9, %v1796_v11  ;;  %v2136_v11 = vld [vmem:[%s3834_s15] sm:$0x1] }
 0x956   :  { %2675 = vmatpush3.xpose.msk.msra.mxu1 %vm1809_vm9, %v1781_v42  ;;  %2676 = vmatprep.mubr.msk.f32.mxu1 %vm3009_vm0, %v3008_v0 }
 0x957   :  { %2679 = vmatprep.subr.bf16.mxu1 %v3008_v0 }
 0x95d   :  { %2677 = vmatmul.mubr.msk.f32.vlgmr.msra.gmra.mxu1 %vm1809_vm9, %v1860_v14 }
 0x95e   :  { %2681 = vmatprep.mubr.msk.bf16.mxu1 %vm3009_vm0, %v3008_v0  ;;  %2680 = vmatpush3.bf16.msra.mxu1 %v1960_v19 }
 0x95f   :  { %2705 = vmatprep.subr.bf16.mxu1 %v3008_v0 }
 0xa15   :  { %v1847_v46 = vpop.f32.mrf.mxu1 }
 0xa16   :  { %v3750_v3 = vadd.f32 %v1847_v46, %v1792_v43 }
 0xa17   :  { %v2672_v1 = vpop.f32.mrf.mxu1 }
 0xa18   :  { %v2308_v47 = vmul.f32 -1.442695, %v3750_v3 }
 0xa19   :  { %v1850_v5 = vpop.f32.mrf.mxu1 }
 0xa1a   :  { %2906 = vpow2.f32 %v2308_v47 }
 0xa1b   :  { %v2673_v7 = vpop.f32.mrf.mxu1 }
 0xa1d   :  { %v1931_v52 = vpop.f32.mrf.mxu1 }
 0xa1e   :  { %v1940_v36 = vsel %vm1939_vm10, %v1931_v52, -1e+30 }
 0xa1f   :  { %v2678_v53 = vpop.f32.mrf.mxu1  ;;  %v1942_v54 = vsel %vm1941_vm11, %v1940_v36, -inf }
 0xa20   :  { %1943 = vmax.xlane.f32.xlu0 %v1942_v54 }
 0xa27   :  { %v2907_v50 = vpop.eup %2906 }
 0xa28   :  { %v1856_v55 = vadd.f32 1.0, %v2907_v50 }
 0xa2a   :  { %2908 = vrcp.f32 %v1856_v55 }
 0xa37   :  { %v2909_v49 = vpop.eup %2908 }
 0xa38   :  { %2004 = vperm.xlu1 %2726, %v2909_v49   ;;  %v2008_v9 = vsub.f32 1.0, %v2909_v49 }
 0xa3c   :  { %2011 = vperm.xlu1 %2726, %v2008_v9  }
 0xaa9   :  { %v1944_v56 = vpop.xlane.xlu0 %1943 }
 0xaaa   :  { %v1945_v2 = vsub.f32 %v1940_v36, %v1944_v56 }
 0xaac   :  { %v1946_v8 = vmul.f32 1.442695, %v1945_v2 }
 0xaae   :  { %2910 = vpow2.f32 %v1946_v8 }
 0xab3   :  { %v2005_v40 = vpop.permute.xlu1 %2004 }
 0xab7   :  { %v2012_v44 = vpop.permute.xlu1 %2011 }
 0xab8   :  { %v2014_v30 = vmul.f32 %v2012_v44, %v3303_v27  ;;  %v2821_v27 = vld [vmem:[%s3833_s14] sm:$0xff]   ;;  %s2978_s14 = scalar_lea.vmem %s2213_s4, 16 }
 0xab9   :  { %p2979_p4 = scmp.ne.s32.totalorder %s2213_s4, %s2978_s14  ;;  %p2984_p6 = scmp.lt.s32.totalorder %s2982_s22, %s2978_s14 }
 0xabb   :  { %v2911_v21 = vpop.eup %2910  ;;  %p2985_p7 = por %p2984_p6, %p2983_p5 }
 0xabc   :  { %v1948_v20 = vsel %vm1941_vm11, %v2911_v21, 0.0 }
 0xabd   :  { %1949 = vadd.xlane.f32.xlu0 %v1948_v20  ;;  %p2986_p8 = pnand %p2985_p7, %p2979_p4 }
 0xb46   :  { %v1950_v39 = vpop.xlane.xlu0 %1949 }
 0xb47   :  { %2912 = vrcp.f32 %v1950_v39 }
 0xb54   :  { %v2913_v61 = vpop.eup %2912 }
 0xb55   :  { %v1952_v12 = vmul.f32 %v2913_v61, %v2911_v21 }
 0xb57   :  { %v1953_v13 = vpack.c.bf16 %v1952_v12, %v1952_v12 }
 0xb59   :  { %2682 = vmatmul.mubr.msk.bf16.vlgmr.msra.gmra.mxu1 %vm1955_vm12, %v1953_v13 }
 0xb5a   :  { %2713 = vmatprep.mubr.msk.bf16.mxu1 %vm3009_vm0, %v3008_v0  ;;  %2706 = vmatpush3.bf16.msra.mxu1 %v2818_v32 }
 0xb5b   :  { %2707 = vmatprep.subr.bf16.mxu1 %v3008_v0 }
 0xb5e   :  { %2708 = vmatpush3.bf16.msra.mxu1 %v2819_v35 }
 0xb5f   :  { %2709 = vmatprep.subr.bf16.mxu1 %v3008_v0 }
 0xb62   :  { %2710 = vmatpush3.bf16.msra.mxu1 %v2820_v45 }
 0xb63   :  { %2711 = vmatprep.subr.bf16.mxu1 %v3008_v0 }
 0xb66   :  { %2712 = vmatpush3.bf16.msra.mxu1 %v2821_v27 }
 0xc19   :  { %v1996_v60 = vpop.f32.mrf.mxu1 }
 0xc1a   :  { %v2007_v22 = vmul.f32 %v2005_v40, %v1996_v60 }
 0xc1b   :  { %v2683_v31 = vpop.f32.mrf.mxu1 }
 0xc1c   :  { %v2015_v33 = vadd.f32 %v2014_v30, %v2007_v22 }
 0xc1d   :  { %v1999_v34 = vpop.f32.mrf.mxu1 }
 0xc1e   :  { %v2016_v37 = vmul.f32 %v2015_v33, %v3375_v63 }
 0xc1f   :  { %v2684_v16 = vpop.f32.mrf.mxu1 }
 0xc20   :  { %v2018_v62 = vadd.f32 %v3309_v38, %v2016_v37 }
 0xc22   :  { %v2019_v41 = vmax.f32 %v2018_v62, 0.0 }
 0xc24   :  { %v2020_v42 = vpack.c.bf16 %v2019_v41, %v2019_v41 }
 0xc26   :  { %2702 = vmatmul.mubr.bf16.vlgmr.msra.gmra.mxu0 %v2020_v42 }
 0xce6   :  { %v2119_v48 = vpop.f32.mrf.mxu0 }
 0xce7   :  { %v2125_v63 = vadd.f32 %v2119_v48, %v3750_v3 }
 0xce8   :  { %v2703_v57 = vpop.f32.mrf.mxu0 }
 0xce9   :  { %v2126_v38 = vmax.f32 %v2125_v63, 0.0 }
 0xcea   :  { %v2122_v26 = vpop.f32.mrf.mxu0 }
 0xceb   :  { %v2127_v51 = vpack.c.bf16 %v2126_v38, %v2126_v38 }
 0xcec   :  { %v2704_v58 = vpop.f32.mrf.mxu0 }
 0xced   :  { %2714 = vmatmul.mubr.msk.bf16.vlgmr.msra.gmra.mxu1 %vm2161_vm13, %v2127_v51 }
 0xdad   :  { %v2199_v0 = vpop.f32.mrf.mxu1 }
 0xdae   :  { %v2200_v14 = vadd.f32 %v2199_v0, %v2136_v11 }
 0xdaf   :  { %v2715_v18 = vpop.f32.mrf.mxu1 }
 0xdb0   :  { %2205 = vst [vmem:[#allocation8] sm:$0x1] %v2200_v14 }
 0xdb1   :  { %v2202_v43 = vpop.f32.mrf.mxu1 }
 0xdb2   :  { %2989 = shalt.err (!%p2986_p8)
}
 0xdb3   :  { %2215 = dma.vmem_to_hbm [thread:$0]  %s2213_s4, 16, %s3835_s16, [#allocation5]   ;;  %v2716_v46 = vpop.f32.mrf.mxu1 }
 0xdb4   :  { %3002 = dma.done.wait [#allocation5], 16  }
 0xdb5   :  { %3003 = vsyncadd [#allocation5], 4294967280 }
 0xdb6   :  { %2219 = vsyncpa [#allocation4], 1 }
 0xdb7   :  { %2220 = vsyncpa [#allocation7], 1 }
 0xdb8   :  { %2221 = vsyncpa [#allocation5], 1 }

</bundles_post_ra>
